<compile_context>
chip_gen: v7x
topology: tpu7x:2x2x1
jax: 0.10.0
libtpu: 0.0.40
codegen_flags: <defaults>
</compile_context>

<pallas_src>
import functools

import jax
import jax.numpy as jnp
from jax.experimental import pallas as pl
from jax.experimental.pallas import tpu as pltpu


def _rup(x, m):
    return ((x + m - 1) // m) * m


# ----------------------------- Pallas kernel --------------------------------
def _gcn_kernel(adj_ref, x_ref,
                w1s_ref, w1n_ref, b1_ref,
                w2s_ref, w2n_ref, b2_ref,
                w3s_ref, w3n_ref, b3_ref,
                out_ref, *, graphs_per_step, compute_dtype):
    """Fused 3-layer GraphSAGE(mean)+sigmoid for `graphs_per_step` graphs.

    Weights are tiny, VMEM-resident (constant index_map) and already padded /
    model-stacked host-side; everything in the layer body stays in vregs.
    """
    w1s, w1n, b1 = w1s_ref[...], w1n_ref[...], b1_ref[...]
    w2s, w2n, b2 = w2s_ref[...], w2n_ref[...], b2_ref[...]
    w3s, w3n, b3 = w3s_ref[...], w3n_ref[...], b3_ref[...]

    for g in range(graphs_per_step):            # static unroll over the block
        adj = adj_ref[g]                        # [N, N]   == A_norm^T, compute_dtype
        x = x_ref[g]                            # [F_pad, N], compute_dtype

        # ---- layer 1: the input is shared by online+target -> aggregate ONCE,
        #      weights are row-stacked [M*H_pad, F_pad].
        x_n = jnp.dot(x, adj, preferred_element_type=jnp.float32)
        z = (jnp.dot(w1s, x, preferred_element_type=jnp.float32)
             + jnp.dot(w1n, x_n.astype(compute_dtype),
                       preferred_element_type=jnp.float32)
             + b1)
        h = jax.nn.sigmoid(z)                   # [M*H_pad, N], f32

        # ---- layers 2-3: model-stacked activations, block-diagonal weights ->
        #      one aggregation matmul per layer for BOTH models.
        for ws, wn, b in ((w2s, w2n, b2), (w3s, w3n, b3)):
            h_cd = h.astype(compute_dtype)      # tiny [M*D, N] cast (no-op in f32)
            h_n = jnp.dot(h_cd, adj, preferred_element_type=jnp.float32)
            z = (jnp.dot(ws, h_cd, preferred_element_type=jnp.float32)
                 + jnp.dot(wn, h_n.astype(compute_dtype),
                           preferred_element_type=jnp.float32)
                 + b)
            h = jax.nn.sigmoid(z)

        out_ref[g] = h.astype(out_ref.dtype)    # [M*E_pad, N] lane-dense store


# ----------------------------- host-side packing ------------------------------
def _pack_stacked_params(params_list, feat, hidden, emb, compute_dtype):
    """Pad to sublane-aligned widths, transpose, and stack online/target.

    Layer 1 (shared input): weights row-stacked  [M*H_pad, F_pad].
    Layers 2-3:             weights block-diag   [M*Dout_pad, M*Din_pad].
    Biases: column vectors  [M*Dout_pad, 1], f32.
    Padded rows produce sigmoid(0)=0.5 garbage that is multiplied by
    zero-padded weight columns downstream, so semantics are preserved.
    """
    f_pad, h_pad, e_pad = _rup(feat, 8), _rup(hidden, 8), _rup(emb, 8)
    n_models = len(params_list)

    def pad_w(w, din_pad, dout_pad):            # w: [din, dout] -> [dout_pad, din_pad]
        wt = w.T
        return jnp.pad(wt, ((0, dout_pad - wt.shape[0]),
                            (0, din_pad - wt.shape[1])))

    def block_diag(mats):
        dout, din = mats[0].shape
        out = jnp.zeros((n_models * dout, n_models * din), mats[0].dtype)
        for m, w in enumerate(mats):
            out = out.at[m * dout:(m + 1) * dout, m * din:(m + 1) * din].set(w)
        return out

    def pad_b(b, dout_pad):
        b = b.reshape(-1)
        return jnp.pad(b, (0, dout_pad - b.shape[0])).reshape(-1, 1)

    w1s = jnp.concatenate([pad_w(p["w_self1"], f_pad, h_pad) for p in params_list], 0)
    w1n = jnp.concatenate([pad_w(p["w_neigh1"], f_pad, h_pad) for p in params_list], 0)
    b1 = jnp.concatenate([pad_b(p["b1"], h_pad) for p in params_list], 0)

    w2s = block_diag([pad_w(p["w_self2"], h_pad, h_pad) for p in params_list])
    w2n = block_diag([pad_w(p["w_neigh2"], h_pad, h_pad) for p in params_list])
    b2 = jnp.concatenate([pad_b(p["b2"], h_pad) for p in params_list], 0)

    w3s = block_diag([pad_w(p["w_self3"], h_pad, e_pad) for p in params_list])
    w3n = block_diag([pad_w(p["w_neigh3"], h_pad, e_pad) for p in params_list])
    b3 = jnp.concatenate([pad_b(p["b3"], e_pad) for p in params_list], 0)

    cd = compute_dtype
    packed = [w1s.astype(cd), w1n.astype(cd), b1.astype(jnp.float32),
              w2s.astype(cd), w2n.astype(cd), b2.astype(jnp.float32),
              w3s.astype(cd), w3n.astype(cd), b3.astype(jnp.float32)]
    return packed, (f_pad, h_pad, e_pad)


# ----------------------------- host-side wrapper -----------------------------
def gcn_forward(adj_norm, node_input, params_list, *,
                compute_dtype=jnp.float32, graphs_per_step=None):
    """Run the fused GCN forward for one or more parameter sets.

    adj_norm:    [N, N] or [B, N, N] row-normalised adjacency (mean aggregator).
    node_input:  [N, F] or [B, N, F] node features.
    params_list: list of parameter dicts (e.g. [online] or [online, target]);
                 all models are evaluated inside a single pallas_call.
    compute_dtype: jnp.bfloat16 halves adjacency HBM traffic / VMEM footprint
                 and is recommended for large N (accumulation stays f32,
                 bias/sigmoid stay f32 -> v5e-safe).
    Returns a tuple of per-model outputs, each [N, E] or [B, N, E] (float32).
    """
    single = adj_norm.ndim == 2
    if single:
        adj_norm = adj_norm[None]
        node_input = node_input[None]
    B, N, _ = adj_norm.shape
    feat = node_input.shape[-1]
    hidden = params_list[0]["w_self1"].shape[1]
    emb = params_list[0]["w_self3"].shape[1]
    n_models = len(params_list)

    packed, (f_pad, h_pad, e_pad) = _pack_stacked_params(
        params_list, feat, hidden, emb, compute_dtype)

    # Graphs per grid step: amortise per-step overhead for small graphs.
    if graphs_per_step is None:
        graphs_per_step = max(1, min(8, 128 // max(N, 1), B))
    bt = graphs_per_step
    b_pad = _rup(B, bt)

    # Layout plumbing (XLA, outside the kernel): A^T and feature-major x,
    # zero-padded and pre-cast to compute_dtype (no in-kernel N^2 cast).
    adj_t = jnp.swapaxes(adj_norm, -1, -2).astype(compute_dtype)
    adj_t = jnp.pad(adj_t, ((0, b_pad - B), (0, 0), (0, 0)))
    x_t = jnp.swapaxes(node_input, -1, -2).astype(compute_dtype)   # [B, F, N]
    x_t = jnp.pad(x_t, ((0, b_pad - B), (0, f_pad - feat), (0, 0)))

    # Explicit VMEM budget: 2x (double-buffer) per-step tiles + resident
    # weights + slack for compiler temporaries / spills.
    cd_isz = jnp.dtype(compute_dtype).itemsize
    tile_bytes = bt * N * (N + f_pad) * cd_isz + bt * n_models * e_pad * N * 4
    weight_bytes = sum(int(a.size) * a.dtype.itemsize for a in packed)
    needed = 2 * tile_bytes + 2 * weight_bytes + (4 << 20)
    vmem_limit = int(min(max(needed, 32 << 20), 96 << 20))
    # TODO(synk): for N beyond the VMEM ceiling (esp. v7x 64 MiB), stream A^T
    # column-tiles with an inner pltpu.emit_pipeline, or use a sparse
    # scalar-prefetch gather instead of the dense O(N^2) adjacency.

    in_specs = [
        pl.BlockSpec((bt, N, N), lambda b: (b, 0, 0)),        # per-step A^T block
        pl.BlockSpec((bt, f_pad, N), lambda b: (b, 0, 0)),    # per-step features
    ]
    # Constant index_map -> weights DMA'd once, VMEM-resident across the batch.
    in_specs += [pl.BlockSpec(a.shape, lambda b: (0, 0)) for a in packed]

    out_shape = jax.ShapeDtypeStruct((b_pad, n_models * e_pad, N), jnp.float32)
    out_specs = pl.BlockSpec((bt, n_models * e_pad, N), lambda b: (b, 0, 0))

    kernel = functools.partial(_gcn_kernel, graphs_per_step=bt,
                               compute_dtype=compute_dtype)

    out = pl.pallas_call(
        kernel,
        out_shape=out_shape,
        grid=(b_pad // bt,),
        in_specs=in_specs,
        out_specs=out_specs,
        compiler_params=pltpu.CompilerParams(
            # Independent graphs -> shardable across the two TensorCores on
            # v7x (no-op on single-TC v5e/v6e).
            dimension_semantics=("parallel",),
            vmem_limit_bytes=vmem_limit),
    )(adj_t, x_t, *packed)

    results = []
    for m in range(n_models):
        o = out[:B, m * e_pad:m * e_pad + emb, :]      # drop batch & row padding
        o = jnp.swapaxes(o, -1, -2)                    # back to node-major [B, N, E]
        results.append(o[0] if single else o)
    return tuple(results)


# ----------------------------- parameters / Net ------------------------------
def init_gcn_params(key, features=5, hidden=10, embedding=1):
    ks = jax.random.split(key, 6)
    scale = 0.1

    def lin(k, fin, fout):
        return scale * jax.random.normal(k, (fin, fout), jnp.float32)

    return {
        "w_self1": lin(ks[0], features, hidden),
        "w_neigh1": lin(ks[1], features, hidden),
        "b1": jnp.zeros((1, hidden), jnp.float32),
        "w_self2": lin(ks[2], hidden, hidden),
        "w_neigh2": lin(ks[3], hidden, hidden),
        "b2": jnp.zeros((1, hidden), jnp.float32),
        "w_self3": lin(ks[4], hidden, embedding),
        "w_neigh3": lin(ks[5], hidden, embedding),
        "b3": jnp.zeros((1, embedding), jnp.float32),
    }


class Net:
    """Mirrors the PyTorch Net: an online GCN plus a frozen deepcopy target."""

    def __init__(self, key, features=5, hidden_layer_size=10, embedding_size=1):
        self.online = init_gcn_params(key, features, hidden_layer_size,
                                      embedding_size)
        self.target = jax.tree_util.tree_map(lambda p: p, self.online)

    def __call__(self, graph_adj_norm, node_input, model="online"):
        params = self.online if model == "online" else self.target
        (out,) = gcn_forward(graph_adj_norm, node_input, [params])
        return out

    def forward_both(self, graph_adj_norm, node_input, **kw):
        """DQN-style fused evaluation: online AND target in one pallas_call."""
        return gcn_forward(graph_adj_norm, node_input,
                           [self.online, self.target], **kw)


# ----------------------------- pure-JAX reference ----------------------------
def _gcn_reference(adj_norm, x, params):
    h = x
    for i in (1, 2, 3):
        h_neigh = jnp.einsum("bij,bjf->bif", adj_norm, h)
        h = jax.nn.sigmoid(h @ params[f"w_self{i}"]
                           + h_neigh @ params[f"w_neigh{i}"]
                           + params[f"b{i}"])
    return h


# ----------------------------- demo ------------------------------------------
if __name__ == "__main__":
    key = jax.random.PRNGKey(0)
    k_graph, k_feat, k_params = jax.random.split(key, 3)

    B, N, FEATURES, HIDDEN, EMB = 4, 8, 5, 10, 1

    # Synthetic batch of random directed graphs, no self loops.
    adj = (jax.random.uniform(k_graph, (B, N, N)) < 0.4).astype(jnp.float32)
    adj = adj * (1.0 - jnp.eye(N, dtype=jnp.float32))
    # Mean aggregation: row-normalise by in-degree (zero rows stay zero, as DGL).
    in_deg = jnp.sum(adj, axis=-1, keepdims=True)
    adj_norm = adj / jnp.maximum(in_deg, 1.0)

    node_input = jax.random.normal(k_feat, (B, N, FEATURES), jnp.float32)

    net = Net(k_params, features=FEATURES, hidden_layer_size=HIDDEN,
              embedding_size=EMB)

    # Fused DQN evaluation: online + target, whole batch, ONE pallas_call.
    out_online, out_target = net.forward_both(adj_norm, node_input)
    jax.block_until_ready((out_online, out_target))
    assert out_online.shape == (B, N, EMB)
    assert out_target.shape == (B, N, EMB)

    # Original PyTorch calling convention: single graph, single model.
    out_single = net(adj_norm[0], node_input[0], model="online")
    jax.block_until_ready(out_single)
    assert out_single.shape == (N, EMB)

    # Correctness vs a pure-JAX reference.
    ref = _gcn_reference(adj_norm, node_input, net.online)
    assert jnp.allclose(out_online, ref, atol=1e-3), float(
        jnp.max(jnp.abs(out_online - ref)))
    assert jnp.allclose(out_target, ref, atol=1e-3)
    assert jnp.allclose(out_single, out_online[0], atol=1e-4)

    # bf16 compute path (recommended for large N: halves adjacency HBM/VMEM).
    out_bf16, out_bf16_t = net.forward_both(adj_norm, node_input,
                                            compute_dtype=jnp.bfloat16)
    jax.block_until_ready((out_bf16, out_bf16_t))
    assert jnp.allclose(out_bf16, ref, atol=5e-2)
    assert jnp.allclose(out_bf16_t, ref, atol=5e-2)

    print("KERNEL_OK")
</pallas_src>

<mosaic_0001>
module attributes {stable_mosaic.version = 11 : i64} {
  func.func @_gcn_kernel(%arg0: i32, %arg1: memref<4x8x8xf32, #tpu.memory_space<vmem>>, %arg2: memref<4x8x8xf32, #tpu.memory_space<vmem>>, %arg3: memref<32x8xf32, #tpu.memory_space<vmem>>, %arg4: memref<32x8xf32, #tpu.memory_space<vmem>>, %arg5: memref<32x1xf32, #tpu.memory_space<vmem>>, %arg6: memref<32x32xf32, #tpu.memory_space<vmem>>, %arg7: memref<32x32xf32, #tpu.memory_space<vmem>>, %arg8: memref<32x1xf32, #tpu.memory_space<vmem>>, %arg9: memref<16x32xf32, #tpu.memory_space<vmem>>, %arg10: memref<16x32xf32, #tpu.memory_space<vmem>>, %arg11: memref<16x1xf32, #tpu.memory_space<vmem>>, %arg12: memref<4x16x8xf32, #tpu.memory_space<vmem>>) attributes {dimension_semantics = [#tpu.dimension_semantics<parallel>], iteration_bounds = array<i64: 1>, scalar_prefetch = 0 : i64, scratch_operands = 0 : i64, tpu.core_type = #tpu.core_type<tc>, window_params = [{transform_indices = @transform_0, window_bounds = array<i64: 4, 8, 8>}, {transform_indices = @transform_1, window_bounds = array<i64: 4, 8, 8>}, {pipeline_mode = #tpu.pipeline_mode<synchronous>, transform_indices = @transform_2, window_bounds = array<i64: 32, 8>}, {pipeline_mode = #tpu.pipeline_mode<synchronous>, transform_indices = @transform_3, window_bounds = array<i64: 32, 8>}, {pipeline_mode = #tpu.pipeline_mode<synchronous>, transform_indices = @transform_4, window_bounds = array<i64: 32, 1>}, {pipeline_mode = #tpu.pipeline_mode<synchronous>, transform_indices = @transform_5, window_bounds = array<i64: 32, 32>}, {pipeline_mode = #tpu.pipeline_mode<synchronous>, transform_indices = @transform_6, window_bounds = array<i64: 32, 32>}, {pipeline_mode = #tpu.pipeline_mode<synchronous>, transform_indices = @transform_7, window_bounds = array<i64: 32, 1>}, {pipeline_mode = #tpu.pipeline_mode<synchronous>, transform_indices = @transform_8, window_bounds = array<i64: 16, 32>}, {pipeline_mode = #tpu.pipeline_mode<synchronous>, transform_indices = @transform_9, window_bounds = array<i64: 16, 32>}, {pipeline_mode = #tpu.pipeline_mode<synchronous>, transform_indices = @transform_10, window_bounds = array<i64: 16, 1>}, {transform_indices = @transform_11, window_bounds = array<i64: 4, 16, 8>}]} {
    %c0 = arith.constant 0 : index
    %c0_0 = arith.constant 0 : index
    %0 = vector.load %arg3[%c0, %c0_0] : memref<32x8xf32, #tpu.memory_space<vmem>>, vector<32x8xf32>
    %c0_1 = arith.constant 0 : index
    %c0_2 = arith.constant 0 : index
    %1 = vector.load %arg4[%c0_1, %c0_2] : memref<32x8xf32, #tpu.memory_space<vmem>>, vector<32x8xf32>
    %c0_3 = arith.constant 0 : index
    %c0_4 = arith.constant 0 : index
    %2 = vector.load %arg5[%c0_3, %c0_4] : memref<32x1xf32, #tpu.memory_space<vmem>>, vector<32x1xf32>
    %c0_5 = arith.constant 0 : index
    %c0_6 = arith.constant 0 : index
    %3 = vector.load %arg6[%c0_5, %c0_6] : memref<32x32xf32, #tpu.memory_space<vmem>>, vector<32x32xf32>
    %c0_7 = arith.constant 0 : index
    %c0_8 = arith.constant 0 : index
    %4 = vector.load %arg7[%c0_7, %c0_8] : memref<32x32xf32, #tpu.memory_space<vmem>>, vector<32x32xf32>
    %c0_9 = arith.constant 0 : index
    %c0_10 = arith.constant 0 : index
    %5 = vector.load %arg8[%c0_9, %c0_10] : memref<32x1xf32, #tpu.memory_space<vmem>>, vector<32x1xf32>
    %c0_11 = arith.constant 0 : index
    %c0_12 = arith.constant 0 : index
    %6 = vector.load %arg9[%c0_11, %c0_12] : memref<16x32xf32, #tpu.memory_space<vmem>>, vector<16x32xf32>
    %c0_13 = arith.constant 0 : index
    %c0_14 = arith.constant 0 : index
    %7 = vector.load %arg10[%c0_13, %c0_14] : memref<16x32xf32, #tpu.memory_space<vmem>>, vector<16x32xf32>
    %c0_15 = arith.constant 0 : index
    %c0_16 = arith.constant 0 : index
    %8 = vector.load %arg11[%c0_15, %c0_16] : memref<16x1xf32, #tpu.memory_space<vmem>>, vector<16x1xf32>
    %c0_17 = arith.constant 0 : index
    %c0_18 = arith.constant 0 : index
    %c0_19 = arith.constant 0 : index
    %9 = vector.load %arg1[%c0_17, %c0_18, %c0_19] : memref<4x8x8xf32, #tpu.memory_space<vmem>>, vector<1x8x8xf32>
    %10 = vector.shape_cast %9 : vector<1x8x8xf32> to vector<8x8xf32>
    %c0_20 = arith.constant 0 : index
    %c0_21 = arith.constant 0 : index
    %c0_22 = arith.constant 0 : index
    %11 = vector.load %arg2[%c0_20, %c0_21, %c0_22] : memref<4x8x8xf32, #tpu.memory_space<vmem>>, vector<1x8x8xf32>
    %12 = vector.shape_cast %11 : vector<1x8x8xf32> to vector<8x8xf32>
    %cst = arith.constant dense<0.000000e+00> : vector<8x8xf32>
    %13 = tpu.matmul %12, %10, %cst {dimension_numbers = #tpu.dot_dimension_numbers<[1], [0], [0], [1], [0, 0, 1, 1], [], []>} : vector<8x8xf32>, vector<8x8xf32>, vector<8x8xf32> -> vector<8x8xf32>
    %cst_23 = arith.constant dense<0.000000e+00> : vector<32x8xf32>
    %14 = tpu.matmul %0, %12, %cst_23 {dimension_numbers = #tpu.dot_dimension_numbers<[1], [0], [0], [1], [0, 0, 1, 1], [], []>} : vector<32x8xf32>, vector<8x8xf32>, vector<32x8xf32> -> vector<32x8xf32>
    %cst_24 = arith.constant dense<0.000000e+00> : vector<32x8xf32>
    %15 = tpu.matmul %1, %13, %cst_24 {dimension_numbers = #tpu.dot_dimension_numbers<[1], [0], [0], [1], [0, 0, 1, 1], [], []>} : vector<32x8xf32>, vector<8x8xf32>, vector<32x8xf32> -> vector<32x8xf32>
    %16 = arith.addf %14, %15 : vector<32x8xf32>
    %17 = vector.broadcast %2 : vector<32x1xf32> to vector<32x8xf32>
    %18 = arith.addf %16, %17 : vector<32x8xf32>
    %19 = arith.negf %18 : vector<32x8xf32>
    %20 = math.exp %19 : vector<32x8xf32>
    %cst_25 = arith.constant 1.000000e+00 : f32
    %21 = vector.broadcast %cst_25 : f32 to vector<32x8xf32>
    %22 = arith.addf %21, %20 : vector<32x8xf32>
    %23 = arith.divf %21, %22 : vector<32x8xf32>
    %cst_26 = arith.constant dense<0.000000e+00> : vector<32x8xf32>
    %24 = tpu.matmul %23, %10, %cst_26 {dimension_numbers = #tpu.dot_dimension_numbers<[1], [0], [0], [1], [0, 0, 1, 1], [], []>} : vector<32x8xf32>, vector<8x8xf32>, vector<32x8xf32> -> vector<32x8xf32>
    %cst_27 = arith.constant dense<0.000000e+00> : vector<32x8xf32>
    %25 = tpu.matmul %3, %23, %cst_27 {dimension_numbers = #tpu.dot_dimension_numbers<[1], [0], [0], [1], [0, 0, 1, 1], [], []>} : vector<32x32xf32>, vector<32x8xf32>, vector<32x8xf32> -> vector<32x8xf32>
    %cst_28 = arith.constant dense<0.000000e+00> : vector<32x8xf32>
    %26 = tpu.matmul %4, %24, %cst_28 {dimension_numbers = #tpu.dot_dimension_numbers<[1], [0], [0], [1], [0, 0, 1, 1], [], []>} : vector<32x32xf32>, vector<32x8xf32>, vector<32x8xf32> -> vector<32x8xf32>
    %27 = arith.addf %25, %26 : vector<32x8xf32>
    %28 = vector.broadcast %5 : vector<32x1xf32> to vector<32x8xf32>
    %29 = arith.addf %27, %28 : vector<32x8xf32>
    %30 = arith.negf %29 : vector<32x8xf32>
    %31 = math.exp %30 : vector<32x8xf32>
    %cst_29 = arith.constant 1.000000e+00 : f32
    %32 = vector.broadcast %cst_29 : f32 to vector<32x8xf32>
    %33 = arith.addf %32, %31 : vector<32x8xf32>
    %34 = arith.divf %32, %33 : vector<32x8xf32>
    %cst_30 = arith.constant dense<0.000000e+00> : vector<32x8xf32>
    %35 = tpu.matmul %34, %10, %cst_30 {dimension_numbers = #tpu.dot_dimension_numbers<[1], [0], [0], [1], [0, 0, 1, 1], [], []>} : vector<32x8xf32>, vector<8x8xf32>, vector<32x8xf32> -> vector<32x8xf32>
    %cst_31 = arith.constant dense<0.000000e+00> : vector<16x8xf32>
    %36 = tpu.matmul %6, %34, %cst_31 {dimension_numbers = #tpu.dot_dimension_numbers<[1], [0], [0], [1], [0, 0, 1, 1], [], []>} : vector<16x32xf32>, vector<32x8xf32>, vector<16x8xf32> -> vector<16x8xf32>
    %cst_32 = arith.constant dense<0.000000e+00> : vector<16x8xf32>
    %37 = tpu.matmul %7, %35, %cst_32 {dimension_numbers = #tpu.dot_dimension_numbers<[1], [0], [0], [1], [0, 0, 1, 1], [], []>} : vector<16x32xf32>, vector<32x8xf32>, vector<16x8xf32> -> vector<16x8xf32>
    %38 = arith.addf %36, %37 : vector<16x8xf32>
    %39 = vector.broadcast %8 : vector<16x1xf32> to vector<16x8xf32>
    %40 = arith.addf %38, %39 : vector<16x8xf32>
    %41 = arith.negf %40 : vector<16x8xf32>
    %42 = math.exp %41 : vector<16x8xf32>
    %cst_33 = arith.constant 1.000000e+00 : f32
    %43 = vector.broadcast %cst_33 : f32 to vector<16x8xf32>
    %44 = arith.addf %43, %42 : vector<16x8xf32>
    %45 = arith.divf %43, %44 : vector<16x8xf32>
    %c0_34 = arith.constant 0 : index
    %c0_35 = arith.constant 0 : index
    %c0_36 = arith.constant 0 : index
    %46 = vector.load %arg12[%c0_34, %c0_35, %c0_36] : memref<4x16x8xf32, #tpu.memory_space<vmem>>, vector<1x16x8xf32>
    %47 = vector.shape_cast %46 : vector<1x16x8xf32> to vector<16x8xf32>
    %48 = vector.shape_cast %45 : vector<16x8xf32> to vector<1x16x8xf32>
    tpu.vector_store %arg12[%c0_34, %c0_35, %c0_36], %48 {strides = array<i32>} : memref<4x16x8xf32, #tpu.memory_space<vmem>>, vector<1x16x8xf32>,
    %c1 = arith.constant 1 : index
    %c0_37 = arith.constant 0 : index
    %c0_38 = arith.constant 0 : index
    %49 = vector.load %arg1[%c1, %c0_37, %c0_38] : memref<4x8x8xf32, #tpu.memory_space<vmem>>, vector<1x8x8xf32>
    %50 = vector.shape_cast %49 : vector<1x8x8xf32> to vector<8x8xf32>
    %c1_39 = arith.constant 1 : index
    %c0_40 = arith.constant 0 : index
    %c0_41 = arith.constant 0 : index
    %51 = vector.load %arg2[%c1_39, %c0_40, %c0_41] : memref<4x8x8xf32, #tpu.memory_space<vmem>>, vector<1x8x8xf32>
    %52 = vector.shape_cast %51 : vector<1x8x8xf32> to vector<8x8xf32>
    %cst_42 = arith.constant dense<0.000000e+00> : vector<8x8xf32>
    %53 = tpu.matmul %52, %50, %cst_42 {dimension_numbers = #tpu.dot_dimension_numbers<[1], [0], [0], [1], [0, 0, 1, 1], [], []>} : vector<8x8xf32>, vector<8x8xf32>, vector<8x8xf32> -> vector<8x8xf32>
    %cst_43 = arith.constant dense<0.000000e+00> : vector<32x8xf32>
    %54 = tpu.matmul %0, %52, %cst_43 {dimension_numbers = #tpu.dot_dimension_numbers<[1], [0], [0], [1], [0, 0, 1, 1], [], []>} : vector<32x8xf32>, vector<8x8xf32>, vector<32x8xf32> -> vector<32x8xf32>
    %cst_44 = arith.constant dense<0.000000e+00> : vector<32x8xf32>
    %55 = tpu.matmul %1, %53, %cst_44 {dimension_numbers = #tpu.dot_dimension_numbers<[1], [0], [0], [1], [0, 0, 1, 1], [], []>} : vector<32x8xf32>, vector<8x8xf32>, vector<32x8xf32> -> vector<32x8xf32>
    %56 = arith.addf %54, %55 : vector<32x8xf32>
    %57 = vector.broadcast %2 : vector<32x1xf32> to vector<32x8xf32>
    %58 = arith.addf %56, %57 : vector<32x8xf32>
    %59 = arith.negf %58 : vector<32x8xf32>
    %60 = math.exp %59 : vector<32x8xf32>
    %cst_45 = arith.constant 1.000000e+00 : f32
    %61 = vector.broadcast %cst_45 : f32 to vector<32x8xf32>
    %62 = arith.addf %61, %60 : vector<32x8xf32>
    %63 = arith.divf %61, %62 : vector<32x8xf32>
    %cst_46 = arith.constant dense<0.000000e+00> : vector<32x8xf32>
    %64 = tpu.matmul %63, %50, %cst_46 {dimension_numbers = #tpu.dot_dimension_numbers<[1], [0], [0], [1], [0, 0, 1, 1], [], []>} : vector<32x8xf32>, vector<8x8xf32>, vector<32x8xf32> -> vector<32x8xf32>
    %cst_47 = arith.constant dense<0.000000e+00> : vector<32x8xf32>
    %65 = tpu.matmul %3, %63, %cst_47 {dimension_numbers = #tpu.dot_dimension_numbers<[1], [0], [0], [1], [0, 0, 1, 1], [], []>} : vector<32x32xf32>, vector<32x8xf32>, vector<32x8xf32> -> vector<32x8xf32>
    %cst_48 = arith.constant dense<0.000000e+00> : vector<32x8xf32>
    %66 = tpu.matmul %4, %64, %cst_48 {dimension_numbers = #tpu.dot_dimension_numbers<[1], [0], [0], [1], [0, 0, 1, 1], [], []>} : vector<32x32xf32>, vector<32x8xf32>, vector<32x8xf32> -> vector<32x8xf32>
    %67 = arith.addf %65, %66 : vector<32x8xf32>
    %68 = vector.broadcast %5 : vector<32x1xf32> to vector<32x8xf32>
    %69 = arith.addf %67, %68 : vector<32x8xf32>
    %70 = arith.negf %69 : vector<32x8xf32>
    %71 = math.exp %70 : vector<32x8xf32>
    %cst_49 = arith.constant 1.000000e+00 : f32
    %72 = vector.broadcast %cst_49 : f32 to vector<32x8xf32>
    %73 = arith.addf %72, %71 : vector<32x8xf32>
    %74 = arith.divf %72, %73 : vector<32x8xf32>
    %cst_50 = arith.constant dense<0.000000e+00> : vector<32x8xf32>
    %75 = tpu.matmul %74, %50, %cst_50 {dimension_numbers = #tpu.dot_dimension_numbers<[1], [0], [0], [1], [0, 0, 1, 1], [], []>} : vector<32x8xf32>, vector<8x8xf32>, vector<32x8xf32> -> vector<32x8xf32>
    %cst_51 = arith.constant dense<0.000000e+00> : vector<16x8xf32>
    %76 = tpu.matmul %6, %74, %cst_51 {dimension_numbers = #tpu.dot_dimension_numbers<[1], [0], [0], [1], [0, 0, 1, 1], [], []>} : vector<16x32xf32>, vector<32x8xf32>, vector<16x8xf32> -> vector<16x8xf32>
    %cst_52 = arith.constant dense<0.000000e+00> : vector<16x8xf32>
    %77 = tpu.matmul %7, %75, %cst_52 {dimension_numbers = #tpu.dot_dimension_numbers<[1], [0], [0], [1], [0, 0, 1, 1], [], []>} : vector<16x32xf32>, vector<32x8xf32>, vector<16x8xf32> -> vector<16x8xf32>
    %78 = arith.addf %76, %77 : vector<16x8xf32>
    %79 = vector.broadcast %8 : vector<16x1xf32> to vector<16x8xf32>
    %80 = arith.addf %78, %79 : vector<16x8xf32>
    %81 = arith.negf %80 : vector<16x8xf32>
    %82 = math.exp %81 : vector<16x8xf32>
    %cst_53 = arith.constant 1.000000e+00 : f32
    %83 = vector.broadcast %cst_53 : f32 to vector<16x8xf32>
    %84 = arith.addf %83, %82 : vector<16x8xf32>
    %85 = arith.divf %83, %84 : vector<16x8xf32>
    %c1_54 = arith.constant 1 : index
    %c0_55 = arith.constant 0 : index
    %c0_56 = arith.constant 0 : index
    %86 = vector.load %arg12[%c1_54, %c0_55, %c0_56] : memref<4x16x8xf32, #tpu.memory_space<vmem>>, vector<1x16x8xf32>
    %87 = vector.shape_cast %86 : vector<1x16x8xf32> to vector<16x8xf32>
    %88 = vector.shape_cast %85 : vector<16x8xf32> to vector<1x16x8xf32>
    tpu.vector_store %arg12[%c1_54, %c0_55, %c0_56], %88 {strides = array<i32>} : memref<4x16x8xf32, #tpu.memory_space<vmem>>, vector<1x16x8xf32>,
    %c2 = arith.constant 2 : index
    %c0_57 = arith.constant 0 : index
    %c0_58 = arith.constant 0 : index
    %89 = vector.load %arg1[%c2, %c0_57, %c0_58] : memref<4x8x8xf32, #tpu.memory_space<vmem>>, vector<1x8x8xf32>
    %90 = vector.shape_cast %89 : vector<1x8x8xf32> to vector<8x8xf32>
    %c2_59 = arith.constant 2 : index
    %c0_60 = arith.constant 0 : index
    %c0_61 = arith.constant 0 : index
    %91 = vector.load %arg2[%c2_59, %c0_60, %c0_61] : memref<4x8x8xf32, #tpu.memory_space<vmem>>, vector<1x8x8xf32>
    %92 = vector.shape_cast %91 : vector<1x8x8xf32> to vector<8x8xf32>
    %cst_62 = arith.constant dense<0.000000e+00> : vector<8x8xf32>
    %93 = tpu.matmul %92, %90, %cst_62 {dimension_numbers = #tpu.dot_dimension_numbers<[1], [0], [0], [1], [0, 0, 1, 1], [], []>} : vector<8x8xf32>, vector<8x8xf32>, vector<8x8xf32> -> vector<8x8xf32>
    %cst_63 = arith.constant dense<0.000000e+00> : vector<32x8xf32>
    %94 = tpu.matmul %0, %92, %cst_63 {dimension_numbers = #tpu.dot_dimension_numbers<[1], [0], [0], [1], [0, 0, 1, 1], [], []>} : vector<32x8xf32>, vector<8x8xf32>, vector<32x8xf32> -> vector<32x8xf32>
    %cst_64 = arith.constant dense<0.000000e+00> : vector<32x8xf32>
    %95 = tpu.matmul %1, %93, %cst_64 {dimension_numbers = #tpu.dot_dimension_numbers<[1], [0], [0], [1], [0, 0, 1, 1], [], []>} : vector<32x8xf32>, vector<8x8xf32>, vector<32x8xf32> -> vector<32x8xf32>
    %96 = arith.addf %94, %95 : vector<32x8xf32>
    %97 = vector.broadcast %2 : vector<32x1xf32> to vector<32x8xf32>
    %98 = arith.addf %96, %97 : vector<32x8xf32>
    %99 = arith.negf %98 : vector<32x8xf32>
    %100 = math.exp %99 : vector<32x8xf32>
    %cst_65 = arith.constant 1.000000e+00 : f32
    %101 = vector.broadcast %cst_65 : f32 to vector<32x8xf32>
    %102 = arith.addf %101, %100 : vector<32x8xf32>
    %103 = arith.divf %101, %102 : vector<32x8xf32>
    %cst_66 = arith.constant dense<0.000000e+00> : vector<32x8xf32>
    %104 = tpu.matmul %103, %90, %cst_66 {dimension_numbers = #tpu.dot_dimension_numbers<[1], [0], [0], [1], [0, 0, 1, 1], [], []>} : vector<32x8xf32>, vector<8x8xf32>, vector<32x8xf32> -> vector<32x8xf32>
    %cst_67 = arith.constant dense<0.000000e+00> : vector<32x8xf32>
    %105 = tpu.matmul %3, %103, %cst_67 {dimension_numbers = #tpu.dot_dimension_numbers<[1], [0], [0], [1], [0, 0, 1, 1], [], []>} : vector<32x32xf32>, vector<32x8xf32>, vector<32x8xf32> -> vector<32x8xf32>
    %cst_68 = arith.constant dense<0.000000e+00> : vector<32x8xf32>
    %106 = tpu.matmul %4, %104, %cst_68 {dimension_numbers = #tpu.dot_dimension_numbers<[1], [0], [0], [1], [0, 0, 1, 1], [], []>} : vector<32x32xf32>, vector<32x8xf32>, vector<32x8xf32> -> vector<32x8xf32>
    %107 = arith.addf %105, %106 : vector<32x8xf32>
    %108 = vector.broadcast %5 : vector<32x1xf32> to vector<32x8xf32>
    %109 = arith.addf %107, %108 : vector<32x8xf32>
    %110 = arith.negf %109 : vector<32x8xf32>
    %111 = math.exp %110 : vector<32x8xf32>
    %cst_69 = arith.constant 1.000000e+00 : f32
    %112 = vector.broadcast %cst_69 : f32 to vector<32x8xf32>
    %113 = arith.addf %112, %111 : vector<32x8xf32>
    %114 = arith.divf %112, %113 : vector<32x8xf32>
    %cst_70 = arith.constant dense<0.000000e+00> : vector<32x8xf32>
    %115 = tpu.matmul %114, %90, %cst_70 {dimension_numbers = #tpu.dot_dimension_numbers<[1], [0], [0], [1], [0, 0, 1, 1], [], []>} : vector<32x8xf32>, vector<8x8xf32>, vector<32x8xf32> -> vector<32x8xf32>
    %cst_71 = arith.constant dense<0.000000e+00> : vector<16x8xf32>
    %116 = tpu.matmul %6, %114, %cst_71 {dimension_numbers = #tpu.dot_dimension_numbers<[1], [0], [0], [1], [0, 0, 1, 1], [], []>} : vector<16x32xf32>, vector<32x8xf32>, vector<16x8xf32> -> vector<16x8xf32>
    %cst_72 = arith.constant dense<0.000000e+00> : vector<16x8xf32>
    %117 = tpu.matmul %7, %115, %cst_72 {dimension_numbers = #tpu.dot_dimension_numbers<[1], [0], [0], [1], [0, 0, 1, 1], [], []>} : vector<16x32xf32>, vector<32x8xf32>, vector<16x8xf32> -> vector<16x8xf32>
    %118 = arith.addf %116, %117 : vector<16x8xf32>
    %119 = vector.broadcast %8 : vector<16x1xf32> to vector<16x8xf32>
    %120 = arith.addf %118, %119 : vector<16x8xf32>
    %121 = arith.negf %120 : vector<16x8xf32>
    %122 = math.exp %121 : vector<16x8xf32>
    %cst_73 = arith.constant 1.000000e+00 : f32
    %123 = vector.broadcast %cst_73 : f32 to vector<16x8xf32>
    %124 = arith.addf %123, %122 : vector<16x8xf32>
    %125 = arith.divf %123, %124 : vector<16x8xf32>
    %c2_74 = arith.constant 2 : index
    %c0_75 = arith.constant 0 : index
    %c0_76 = arith.constant 0 : index
    %126 = vector.load %arg12[%c2_74, %c0_75, %c0_76] : memref<4x16x8xf32, #tpu.memory_space<vmem>>, vector<1x16x8xf32>
    %127 = vector.shape_cast %126 : vector<1x16x8xf32> to vector<16x8xf32>
    %128 = vector.shape_cast %125 : vector<16x8xf32> to vector<1x16x8xf32>
    tpu.vector_store %arg12[%c2_74, %c0_75, %c0_76], %128 {strides = array<i32>} : memref<4x16x8xf32, #tpu.memory_space<vmem>>, vector<1x16x8xf32>,
    %c3 = arith.constant 3 : index
    %c0_77 = arith.constant 0 : index
    %c0_78 = arith.constant 0 : index
    %129 = vector.load %arg1[%c3, %c0_77, %c0_78] : memref<4x8x8xf32, #tpu.memory_space<vmem>>, vector<1x8x8xf32>
    %130 = vector.shape_cast %129 : vector<1x8x8xf32> to vector<8x8xf32>
    %c3_79 = arith.constant 3 : index
    %c0_80 = arith.constant 0 : index
    %c0_81 = arith.constant 0 : index
    %131 = vector.load %arg2[%c3_79, %c0_80, %c0_81] : memref<4x8x8xf32, #tpu.memory_space<vmem>>, vector<1x8x8xf32>
    %132 = vector.shape_cast %131 : vector<1x8x8xf32> to vector<8x8xf32>
    %cst_82 = arith.constant dense<0.000000e+00> : vector<8x8xf32>
    %133 = tpu.matmul %132, %130, %cst_82 {dimension_numbers = #tpu.dot_dimension_numbers<[1], [0], [0], [1], [0, 0, 1, 1], [], []>} : vector<8x8xf32>, vector<8x8xf32>, vector<8x8xf32> -> vector<8x8xf32>
    %cst_83 = arith.constant dense<0.000000e+00> : vector<32x8xf32>
    %134 = tpu.matmul %0, %132, %cst_83 {dimension_numbers = #tpu.dot_dimension_numbers<[1], [0], [0], [1], [0, 0, 1, 1], [], []>} : vector<32x8xf32>, vector<8x8xf32>, vector<32x8xf32> -> vector<32x8xf32>
    %cst_84 = arith.constant dense<0.000000e+00> : vector<32x8xf32>
    %135 = tpu.matmul %1, %133, %cst_84 {dimension_numbers = #tpu.dot_dimension_numbers<[1], [0], [0], [1], [0, 0, 1, 1], [], []>} : vector<32x8xf32>, vector<8x8xf32>, vector<32x8xf32> -> vector<32x8xf32>
    %136 = arith.addf %134, %135 : vector<32x8xf32>
    %137 = vector.broadcast %2 : vector<32x1xf32> to vector<32x8xf32>
    %138 = arith.addf %136, %137 : vector<32x8xf32>
    %139 = arith.negf %138 : vector<32x8xf32>
    %140 = math.exp %139 : vector<32x8xf32>
    %cst_85 = arith.constant 1.000000e+00 : f32
    %141 = vector.broadcast %cst_85 : f32 to vector<32x8xf32>
    %142 = arith.addf %141, %140 : vector<32x8xf32>
    %143 = arith.divf %141, %142 : vector<32x8xf32>
    %cst_86 = arith.constant dense<0.000000e+00> : vector<32x8xf32>
    %144 = tpu.matmul %143, %130, %cst_86 {dimension_numbers = #tpu.dot_dimension_numbers<[1], [0], [0], [1], [0, 0, 1, 1], [], []>} : vector<32x8xf32>, vector<8x8xf32>, vector<32x8xf32> -> vector<32x8xf32>
    %cst_87 = arith.constant dense<0.000000e+00> : vector<32x8xf32>
    %145 = tpu.matmul %3, %143, %cst_87 {dimension_numbers = #tpu.dot_dimension_numbers<[1], [0], [0], [1], [0, 0, 1, 1], [], []>} : vector<32x32xf32>, vector<32x8xf32>, vector<32x8xf32> -> vector<32x8xf32>
    %cst_88 = arith.constant dense<0.000000e+00> : vector<32x8xf32>
    %146 = tpu.matmul %4, %144, %cst_88 {dimension_numbers = #tpu.dot_dimension_numbers<[1], [0], [0], [1], [0, 0, 1, 1], [], []>} : vector<32x32xf32>, vector<32x8xf32>, vector<32x8xf32> -> vector<32x8xf32>
    %147 = arith.addf %145, %146 : vector<32x8xf32>
    %148 = vector.broadcast %5 : vector<32x1xf32> to vector<32x8xf32>
    %149 = arith.addf %147, %148 : vector<32x8xf32>
    %150 = arith.negf %149 : vector<32x8xf32>
    %151 = math.exp %150 : vector<32x8xf32>
    %cst_89 = arith.constant 1.000000e+00 : f32
    %152 = vector.broadcast %cst_89 : f32 to vector<32x8xf32>
    %153 = arith.addf %152, %151 : vector<32x8xf32>
    %154 = arith.divf %152, %153 : vector<32x8xf32>
    %cst_90 = arith.constant dense<0.000000e+00> : vector<32x8xf32>
    %155 = tpu.matmul %154, %130, %cst_90 {dimension_numbers = #tpu.dot_dimension_numbers<[1], [0], [0], [1], [0, 0, 1, 1], [], []>} : vector<32x8xf32>, vector<8x8xf32>, vector<32x8xf32> -> vector<32x8xf32>
    %cst_91 = arith.constant dense<0.000000e+00> : vector<16x8xf32>
    %156 = tpu.matmul %6, %154, %cst_91 {dimension_numbers = #tpu.dot_dimension_numbers<[1], [0], [0], [1], [0, 0, 1, 1], [], []>} : vector<16x32xf32>, vector<32x8xf32>, vector<16x8xf32> -> vector<16x8xf32>
    %cst_92 = arith.constant dense<0.000000e+00> : vector<16x8xf32>
    %157 = tpu.matmul %7, %155, %cst_92 {dimension_numbers = #tpu.dot_dimension_numbers<[1], [0], [0], [1], [0, 0, 1, 1], [], []>} : vector<16x32xf32>, vector<32x8xf32>, vector<16x8xf32> -> vector<16x8xf32>
    %158 = arith.addf %156, %157 : vector<16x8xf32>
    %159 = vector.broadcast %8 : vector<16x1xf32> to vector<16x8xf32>
    %160 = arith.addf %158, %159 : vector<16x8xf32>
    %161 = arith.negf %160 : vector<16x8xf32>
    %162 = math.exp %161 : vector<16x8xf32>
    %cst_93 = arith.constant 1.000000e+00 : f32
    %163 = vector.broadcast %cst_93 : f32 to vector<16x8xf32>
    %164 = arith.addf %163, %162 : vector<16x8xf32>
    %165 = arith.divf %163, %164 : vector<16x8xf32>
    %c3_94 = arith.constant 3 : index
    %c0_95 = arith.constant 0 : index
    %c0_96 = arith.constant 0 : index
    %166 = vector.load %arg12[%c3_94, %c0_95, %c0_96] : memref<4x16x8xf32, #tpu.memory_space<vmem>>, vector<1x16x8xf32>
    %167 = vector.shape_cast %166 : vector<1x16x8xf32> to vector<16x8xf32>
    %168 = vector.shape_cast %165 : vector<16x8xf32> to vector<1x16x8xf32>
    tpu.vector_store %arg12[%c3_94, %c0_95, %c0_96], %168 {strides = array<i32>} : memref<4x16x8xf32, #tpu.memory_space<vmem>>, vector<1x16x8xf32>,
    return
  }
  func.func @transform_0(%arg0: i32) -> (i32, i32, i32) {
    %c0_i32 = arith.constant 0 : i32
    %c0_i32_0 = arith.constant 0 : i32
    %c0_i32_1 = arith.constant 0 : i32
    return %arg0, %c0_i32, %c0_i32_0 : i32, i32, i32
  }
  func.func @transform_1(%arg0: i32) -> (i32, i32, i32) {
    %c0_i32 = arith.constant 0 : i32
    %c0_i32_0 = arith.constant 0 : i32
    %c0_i32_1 = arith.constant 0 : i32
    return %arg0, %c0_i32, %c0_i32_0 : i32, i32, i32
  }
  func.func @transform_2(%arg0: i32) -> (i32, i32) {
    %c0_i32 = arith.constant 0 : i32
    %c0_i32_0 = arith.constant 0 : i32
    %c0_i32_1 = arith.constant 0 : i32
    return %c0_i32, %c0_i32_0 : i32, i32
  }
  func.func @transform_3(%arg0: i32) -> (i32, i32) {
    %c0_i32 = arith.constant 0 : i32
    %c0_i32_0 = arith.constant 0 : i32
    %c0_i32_1 = arith.constant 0 : i32
    return %c0_i32, %c0_i32_0 : i32, i32
  }
  func.func @transform_4(%arg0: i32) -> (i32, i32) {
    %c0_i32 = arith.constant 0 : i32
    %c0_i32_0 = arith.constant 0 : i32
    %c0_i32_1 = arith.constant 0 : i32
    return %c0_i32, %c0_i32_0 : i32, i32
  }
  func.func @transform_5(%arg0: i32) -> (i32, i32) {
    %c0_i32 = arith.constant 0 : i32
    %c0_i32_0 = arith.constant 0 : i32
    %c0_i32_1 = arith.constant 0 : i32
    return %c0_i32, %c0_i32_0 : i32, i32
  }
  func.func @transform_6(%arg0: i32) -> (i32, i32) {
    %c0_i32 = arith.constant 0 : i32
    %c0_i32_0 = arith.constant 0 : i32
    %c0_i32_1 = arith.constant 0 : i32
    return %c0_i32, %c0_i32_0 : i32, i32
  }
  func.func @transform_7(%arg0: i32) -> (i32, i32) {
    %c0_i32 = arith.constant 0 : i32
    %c0_i32_0 = arith.constant 0 : i32
    %c0_i32_1 = arith.constant 0 : i32
    return %c0_i32, %c0_i32_0 : i32, i32
  }
  func.func @transform_8(%arg0: i32) -> (i32, i32) {
    %c0_i32 = arith.constant 0 : i32
    %c0_i32_0 = arith.constant 0 : i32
    %c0_i32_1 = arith.constant 0 : i32
    return %c0_i32, %c0_i32_0 : i32, i32
  }
  func.func @transform_9(%arg0: i32) -> (i32, i32) {
    %c0_i32 = arith.constant 0 : i32
    %c0_i32_0 = arith.constant 0 : i32
    %c0_i32_1 = arith.constant 0 : i32
    return %c0_i32, %c0_i32_0 : i32, i32
  }
  func.func @transform_10(%arg0: i32) -> (i32, i32) {
    %c0_i32 = arith.constant 0 : i32
    %c0_i32_0 = arith.constant 0 : i32
    %c0_i32_1 = arith.constant 0 : i32
    return %c0_i32, %c0_i32_0 : i32, i32
  }
  func.func @transform_11(%arg0: i32) -> (i32, i32, i32) {
    %c0_i32 = arith.constant 0 : i32
    %c0_i32_0 = arith.constant 0 : i32
    %c0_i32_1 = arith.constant 0 : i32
    return %arg0, %c0_i32, %c0_i32_0 : i32, i32, i32
  }
}

</mosaic_0001>

<bundles_post_ra>
// kernel: tpu_custom_call.1
= control target key start
LH: loop header
LB: loop body
LE: loop exit
PB: predicated region body
PF: predicated region fallthrough
CT: control target
= control target key end

     0   :  { %vm70_vm0 = vcmask 64512   ;;  %v4566_v0 = vmov 0.0   ;;  %vm4567_vm1 = vmmov 0   ;;  %v4568_v4 = vmov 0   ;;  %s5104_s0 = inlined_call_operand.vmem [shape: f32[4,8,8], index: 0, kind: input, shape index: {}]   ;;  %s5105_s1 = inlined_call_operand.vmem [shape: f32[4,8,8], index: 1, kind: input, shape index: {}]   ;;  %s5106_s3 = inlined_call_operand.vmem [shape: f32[32,8], index: 3, kind: input, shape index: {}]   ;;  %s5107_s4 = inlined_call_operand.vmem [shape: f32[32,1], index: 4, kind: input, shape index: {}]   ;;  %s5108_s7 = inlined_call_operand.vmem [shape: f32[32,1], index: 7, kind: input, shape index: {}]   ;;  %s5109_s10 = inlined_call_operand.vmem [shape: f32[16,1], index: 10, kind: input, shape index: {}]   ;;  %s5110_s2 = inlined_call_operand.vmem [shape: f32[32,8], index: 2, kind: input, shape index: {}]   ;;  %s5111_s6 = inlined_call_operand.vmem [shape: f32[32,32], index: 6, kind: input, shape index: {}]   ;;  %s5112_s5 = inlined_call_operand.vmem [shape: f32[32,32], index: 5, kind: input, shape index: {}]   ;;  %s5113_s9 = inlined_call_operand.vmem [shape: f32[16,32], index: 9, kind: input, shape index: {}]   ;;  %s5114_s8 = inlined_call_operand.vmem [shape: f32[16,32], index: 8, kind: input, shape index: {}]   ;;  %s5115_s11 = inlined_call_operand.vmem [shape: f32[4,16,8], index: 11, kind: output, shape index: {}]  }
   0x1   :  { %3885 = vmatprep.subr.mxu1 %v4566_v0  ;;  %v68_v1 = vld [vmem:[%s5104_s0] sm:$0xff]  ;;  %3887 = vmatprep.mubr.msk.f32.mxu1 %vm4567_vm1, %v4566_v0  ;;  %v48_v6 = vld [vmem:[%s5107_s4 + $0x10] sm:$0xff]  ;;  %v47_v7 = vld [vmem:[%s5107_s4 + $0x8] sm:$0xff]  ;;  %vm483_vm2 = vcmask 261120  }
   0x2   :  { %v69_v2 = vld [vmem:[%s5105_s1] sm:$0xff]  ;;  %3886 = vmatpush3.msra.mxu1 %v68_v1  ;;  %3906 = vmatprep.subr.mxu0 %v68_v1  ;;  %v49_v8 = vld [vmem:[%s5107_s4 + $0x18] sm:$0xff]  ;;  %v59_v10 = vld [vmem:[%s5108_s7 + $0x8] sm:$0xff] }
   0x3   :  { %3888 = vmatmul.mubr.msk.f32.vlgmr.msra.gmra.mrb[0].mxu1 %vm70_vm0, %v69_v2  ;;  %3907 = vmatpush3.msra.mxu0 %v68_v1  ;;  %v4642_v3 = vld [vmem:[%s5106_s3] sm:$0xff]  ;;  %v60_v11 = vld [vmem:[%s5108_s7 + $0x10] sm:$0xff]  ;;  %v61_v12 = vld [vmem:[%s5108_s7 + $0x18] sm:$0xff] }
   0x4   :  { %3892 = vmatprep.mubr.msk.f32.mxu1 %vm70_vm0, %v4642_v3  ;;  %4404 = vset.pattern.permute.xlu0 %v4568_v4  ;;  %v46_v5 = vld [vmem:[%s5107_s4] sm:$0xff]  ;;  %v67_v14 = vld [vmem:[%s5109_s10 + $0x8] sm:$0xff]  ;;  %v4684_v18 = vld [vmem:[%s5106_s3 + $0x10] sm:$0xff] }
   0x5   :  { %4405 = vset.pattern.permute.xlu1 %v4568_v4  ;;  %340 = vperm.xlu0 %4404, %v46_v5   ;;  %v58_v9 = vld [vmem:[%s5108_s7] sm:$0xff]  ;;  %v4679_v16 = vld [vmem:[%s5106_s3 + $0x8] sm:$0xff]  ;;  %v4693_v19 = vld [vmem:[%s5106_s3 + $0x18] sm:$0xff] }
   0x6   :  { %350 = vperm.xlu1 %4405, %v48_v6   ;;  %v66_v13 = vld [vmem:[%s5109_s10] sm:$0xff]  ;;  %v4707_v21 = vld [vmem:[%s5110_s2 + $0x8] sm:$0xff]  ;;  %v4712_v22 = vld [vmem:[%s5110_s2 + $0x10] sm:$0xff] }
   0x7   :  { %v4698_v20 = vld [vmem:[%s5110_s2] sm:$0xff]  ;;  %v4721_v23 = vld [vmem:[%s5110_s2 + $0x18] sm:$0xff]  ;;  %v4751_v61 = vld [vmem:[%s5111_s6 + $0x8] sm:$0xff] }
   0x8   :  { %v4744_v54 = vld [vmem:[%s5111_s6] sm:$0xff]  ;;  %v4756_v62 = vld [vmem:[%s5111_s6 + $0x10] sm:$0xff]  ;;  %v4765_v63 = vld [vmem:[%s5111_s6 + $0x18] sm:$0xff] }
   0x9   :  { %345 = vperm.xlu0 %4404, %v47_v7   ;;  %v4784_v4 = vld [vmem:[%s5112_s5 + $0x10] sm:$0xff]  ;;  %v4790_v5 = vld [vmem:[%s5104_s0 + $0x8] sm:$0xff]  ;;  %v4799_v6 = vld [vmem:[%s5112_s5 + $0x18] sm:$0xff] }
   0xa   :  { %355 = vperm.xlu1 %4405, %v49_v8   ;;  %v3557_v7 = vld [vmem:[%s5105_s1 + $0x8] sm:$0xff] }
   0xd   :  { %680 = vperm.xlu0 %4404, %v58_v9  }
   0xe   :  { %685 = vperm.xlu1 %4405, %v59_v10  }
  0x11   :  { %690 = vperm.xlu0 %4404, %v60_v11  }
  0x12   :  { %695 = vperm.xlu1 %4405, %v61_v12  }
  0x15   :  { %987 = vperm.xlu0 %4404, %v66_v13  }
  0x16   :  { %992 = vperm.xlu1 %4405, %v67_v14  }
  0x84   :  { %v4725_v24 = vpop.permute.xlu0 %340 }
  0x85   :  { %v4727_v25 = vpop.permute.xlu1 %350 }
  0x88   :  { %v4729_v26 = vpop.permute.xlu0 %345 }
  0x89   :  { %v4733_v32 = vpop.permute.xlu1 %355 }
  0x8c   :  { %v4814_v9 = vpop.permute.xlu0 %680 }
  0x8d   :  { %v4812_v8 = vpop.permute.xlu1 %685 }
  0xd6   :  { %v140_v15 = vpop.f32.mrb[0].mxu1 }
  0xd7   :  { %v3889_v17 = vpop.f32.mrb[1].mxu1  ;;  %3890 = vmatprep.subr.mxu1 %v140_v15 }
  0xd8   :  { %3891 = vmatpush3.msra.mxu1 %v140_v15  ;;  %v4818_v15 = vpop.permute.xlu1 %695 }
  0xd9   :  { %3893 = vmatmul.mubr.msk.f32.vlgmr.msra.gmra.mrb[2].mxu1 %vm70_vm0, %v4679_v16  ;;  %3898 = vmatprep.subr.mxu1 %v69_v2 }
  0xda   :  { %3895 = vmatprep.mubr.msk.f32.mxu1 %vm70_vm0, %v4684_v18  ;;  %3899 = vmatpush3.msra.mxu1 %v69_v2  ;;  %v4779_v2 = vld [vmem:[%s5112_s5 + $0x8] sm:$0xff] }
  0xdb   :  { %3942 = vmatprep.subr.mxu1 %v68_v1 }
  0xdd   :  { %3896 = vmatmul.mubr.msk.f32.gmra.mrb[4].mxu1 %vm70_vm0, %v4693_v19 }
  0xde   :  { %3900 = vmatprep.mubr.msk.f32.mxu1 %vm70_vm0, %v4698_v20 }
  0xe1   :  { %3901 = vmatmul.mubr.msk.f32.vlgmr.msra.gmra.mrb[2].mxu1 %vm70_vm0, %v4707_v21 }
  0xe2   :  { %3903 = vmatprep.mubr.msk.f32.mxu1 %vm70_vm0, %v4712_v22  ;;  %3943 = vmatpush3.msra.mxu1 %v68_v1  ;;  %v4770_v1 = vld [vmem:[%s5112_s5] sm:$0xff] }
  0xe5   :  { %3904 = vmatmul.mubr.msk.f32.gmra.mrb[4].mxu1 %vm70_vm0, %v4721_v23 }
 0x1b4   :  { %v3902_v27 = vpop.f32.mrb[2].mxu1 }
 0x1b5   :  { %v359_v28 = vadd.f32 %v3902_v27, %v4729_v26  ;;  %v319_v29 = vpop.f32.mrb[3].mxu1 }
 0x1b6   :  { %v358_v30 = vadd.f32 %v4725_v24, %v319_v29 }
 0x1b7   :  { %v3527_v31 = vmul.f32 -1.442695, %v359_v28  ;;  %v4820_v28 = vpop.permute.xlu0 %690 }
 0x1b8   :  { %v3526_v33 = vmul.f32 -1.442695, %v358_v30  ;;  %v3905_v34 = vpop.f32.mrb[4].mxu1 }
 0x1b9   :  { %4406 = vpow2.f32 %v3527_v31  ;;  %v361_v35 = vadd.f32 %v3905_v34, %v4733_v32  ;;  %v329_v36 = vpop.f32.mrb[5].mxu1 }
 0x1ba   :  { %4408 = vpow2.f32 %v3526_v33  ;;  %v360_v37 = vadd.f32 %v4727_v25, %v329_v36 }
 0x1bb   :  { %v3529_v38 = vmul.f32 -1.442695, %v361_v35 }
 0x1bc   :  { %v3528_v39 = vmul.f32 -1.442695, %v360_v37 }
 0x1bd   :  { %4410 = vpow2.f32 %v3529_v38 }
 0x1be   :  { %4412 = vpow2.f32 %v3528_v39 }
 0x1c3   :  { %v4407_v40 = vpop.eup %4406 }
 0x1c4   :  { %v4409_v41 = vpop.eup %4408  ;;  %v375_v42 = vadd.f32 1.0, %v4407_v40 }
 0x1c5   :  { %v374_v43 = vadd.f32 1.0, %v4409_v41 }
 0x1c6   :  { %4414 = vrcp.f32 %v375_v42 }
 0x1c7   :  { %v4411_v44 = vpop.eup %4410  ;;  %4416 = vrcp.f32 %v374_v43 }
 0x1c8   :  { %v4413_v45 = vpop.eup %4412  ;;  %v377_v46 = vadd.f32 1.0, %v4411_v44 }
 0x1c9   :  { %v376_v47 = vadd.f32 1.0, %v4413_v45 }
 0x1ca   :  { %4418 = vrcp.f32 %v377_v46 }
 0x1cb   :  { %4420 = vrcp.f32 %v376_v47 }
 0x1d0   :  { %v4415_v48 = vpop.eup %4414 }
 0x1d1   :  { %v4417_v49 = vpop.eup %4416 }
 0x1d2   :  { %3908 = vmatprep.mubr.msk.f32.mxu0 %vm70_vm0, %v4417_v49  ;;  %v4241_v50 = vpack.c.bf16 %v4415_v48, %v4417_v49 }
 0x1d3   :  { %3909 = vmatmul.mubr.msk.f32.vlgmr.msra.gmra.mrb[0].mxu0 %vm70_vm0, %v4415_v48 }
 0x1d4   :  { %v4419_v51 = vpop.eup %4418 }
 0x1d5   :  { %v4421_v52 = vpop.eup %4420 }
 0x1d6   :  { %3911 = vmatprep.mubr.msk.f32.mxu0 %vm70_vm0, %v4421_v52  ;;  %v4245_v53 = vpack.c.bf16 %v4419_v51, %v4421_v52 }
 0x1d7   :  { %3912 = vmatmul.mubr.msk.f32.gmra.mrb[2].mxu0 %vm70_vm0, %v4419_v51  ;;  %v4847_v51 = vld [vmem:[%s5113_s9] sm:$0xff] }
 0x1d8   :  { %3922 = vmatprep.mubr.msk.f32.mxu0 %vm483_vm2, %v4744_v54 }
 0x2a6   :  { %v3910_v55 = vpop.f32.mrb[0].mxu0 }
 0x2a7   :  { %v464_v56 = vpop.f32.mrb[1].mxu0 }
 0x2a8   :  { %v4233_v57 = vpack.c.bf16 %v3910_v55, %v464_v56 }
 0x2aa   :  { %v3913_v58 = vpop.f32.mrb[2].mxu0  ;;  %4234 = vmatprep.subr.bf16.mxu0 %v4233_v57 }
 0x2ab   :  { %v474_v59 = vpop.f32.mrb[3].mxu0  ;;  %4236 = vmatpush3.bf16.msra.mxu0 %v4233_v57 }
 0x2ac   :  { %v4237_v60 = vpack.c.bf16 %v3913_v58, %v474_v59 }
 0x2ae   :  { %4238 = vmatprep.subr.bf16.mxu0 %v4237_v60 }
 0x2af   :  { %4240 = vmatpush3.bf16.msra.mxu0 %v4237_v60 }
 0x2b0   :  { %4242 = vmatprep.subr.bf16.mxu0 %v4241_v50 }
 0x2b2   :  { %3923 = vmatmul.mubr.msk.f32.vlgmr.msra.gmra.mrb[4].mxu0 %vm483_vm2, %v4751_v61 }
 0x2b3   :  { %4244 = vmatpush3.bf16.msra.mxu0 %v4241_v50  ;;  %3925 = vmatprep.mubr.msk.f32.mxu0 %vm483_vm2, %v4756_v62 }
 0x2b4   :  { %4246 = vmatprep.subr.bf16.mxu0 %v4245_v53 }
 0x2b6   :  { %3926 = vmatmul.mubr.msk.f32.gmra.mrb[6].mxu0 %vm483_vm2, %v4765_v63 }
 0x2b7   :  { %4248 = vmatpush3.bf16.msra.mxu0 %v4245_v53  ;;  %3936 = vmatprep.mubr.msk.f32.mxu0 %vm483_vm2, %v4770_v1 }
 0x2b8   :  { %3972 = vmatprep.subr.mxu0 %v4566_v0 }
 0x2ba   :  { %3937 = vmatmul.mubr.msk.f32.vlgmr.msra.gmra.mrb[4].mxu0 %vm483_vm2, %v4779_v2 }
 0x2bb   :  { %3939 = vmatprep.mubr.msk.f32.mxu0 %vm483_vm2, %v4784_v4  ;;  %3973 = vmatpush3.msra.mxu0 %v4790_v5 }
 0x2be   :  { %3940 = vmatmul.mubr.msk.f32.gmra.mrb[6].mxu0 %vm483_vm2, %v4799_v6 }
 0x2bf   :  { %3974 = vmatprep.mubr.msk.f32.mxu0 %vm4567_vm1, %v4566_v0 }
 0x2c2   :  { %3975 = vmatmul.mubr.msk.f32.vlgmr.msra.gmra.mrb[8].mxu0 %vm70_vm0, %v3557_v7 }
 0x2c3   :  { %3979 = vmatprep.mubr.msk.f32.mxu0 %vm70_vm0, %v4642_v3 }
 0x38d   :  { %v3938_v10 = vpop.f32.mrb[4].mxu0 }
 0x38e   :  { %v699_v11 = vadd.f32 %v3938_v10, %v4812_v8  ;;  %v659_v12 = vpop.f32.mrb[5].mxu0 }
 0x38f   :  { %v698_v13 = vadd.f32 %v4814_v9, %v659_v12 }
 0x390   :  { %v3543_v14 = vmul.f32 -1.442695, %v699_v11 }
 0x391   :  { %v3542_v17 = vmul.f32 -1.442695, %v698_v13  ;;  %v3941_v27 = vpop.f32.mrb[6].mxu0 }
 0x392   :  { %4422 = vpow2.f32 %v3543_v14  ;;  %v701_v29 = vadd.f32 %v3941_v27, %v4818_v15  ;;  %v669_v30 = vpop.f32.mrb[7].mxu0 }
 0x393   :  { %4424 = vpow2.f32 %v3542_v17  ;;  %v700_v31 = vadd.f32 %v4820_v28, %v669_v30 }
 0x394   :  { %v3545_v33 = vmul.f32 -1.442695, %v701_v29 }
 0x395   :  { %v3544_v34 = vmul.f32 -1.442695, %v700_v31  ;;  %v1084_v35 = vpop.f32.mrb[8].mxu0 }
 0x396   :  { %4426 = vpow2.f32 %v3545_v33  ;;  %3977 = vmatprep.subr.mxu0 %v1084_v35  ;;  %v3976_v36 = vpop.f32.mrb[9].mxu0 }
 0x397   :  { %4428 = vpow2.f32 %v3544_v34  ;;  %3978 = vmatpush3.msra.mxu0 %v1084_v35 }
 0x398   :  { %3980 = vmatmul.mubr.msk.f32.vlgmr.msra.gmra.mrb[10].mxu0 %vm70_vm0, %v4679_v16  ;;  %3985 = vmatprep.subr.mxu0 %v3557_v7 }
 0x399   :  { %3982 = vmatprep.mubr.msk.f32.mxu0 %vm70_vm0, %v4684_v18  ;;  %3986 = vmatpush3.msra.mxu0 %v3557_v7 }
 0x39a   :  { %4029 = vmatprep.subr.mxu0 %v4790_v5 }
 0x39c   :  { %v4423_v37 = vpop.eup %4422  ;;  %3983 = vmatmul.mubr.msk.f32.gmra.mrb[12].mxu0 %vm70_vm0, %v4693_v19 }
 0x39d   :  { %v4425_v38 = vpop.eup %4424  ;;  %v715_v39 = vadd.f32 1.0, %v4423_v37  ;;  %3987 = vmatprep.mubr.msk.f32.mxu0 %vm70_vm0, %v4698_v20 }
 0x39e   :  { %v714_v40 = vadd.f32 1.0, %v4425_v38 }
 0x39f   :  { %4430 = vrcp.f32 %v715_v39 }
 0x3a0   :  { %v4427_v41 = vpop.eup %4426  ;;  %4432 = vrcp.f32 %v714_v40  ;;  %3988 = vmatmul.mubr.msk.f32.vlgmr.msra.gmra.mrb[10].mxu0 %vm70_vm0, %v4707_v21  ;;  %v4858_v40 = vld [vmem:[%s5113_s9 + $0x8] sm:$0xff] }
 0x3a1   :  { %v4429_v42 = vpop.eup %4428  ;;  %v717_v43 = vadd.f32 1.0, %v4427_v41  ;;  %3990 = vmatprep.mubr.msk.f32.mxu0 %vm70_vm0, %v4712_v22  ;;  %4030 = vmatpush3.msra.mxu0 %v4790_v5  ;;  %v4863_v41 = vld [vmem:[%s5114_s8] sm:$0xff] }
 0x3a2   :  { %v716_v44 = vadd.f32 1.0, %v4429_v42 }
 0x3a3   :  { %4434 = vrcp.f32 %v717_v43 }
 0x3a4   :  { %4436 = vrcp.f32 %v716_v44  ;;  %3991 = vmatmul.mubr.msk.f32.gmra.mrb[12].mxu0 %vm70_vm0, %v4721_v23  ;;  %v4872_v44 = vld [vmem:[%s5114_s8 + $0x8] sm:$0xff] }
 0x3a9   :  { %v4431_v45 = vpop.eup %4430 }
 0x3aa   :  { %v4433_v46 = vpop.eup %4432 }
 0x3ab   :  { %3944 = vmatprep.mubr.msk.f32.mxu1 %vm70_vm0, %v4433_v46  ;;  %v4257_v47 = vpack.c.bf16 %v4431_v45, %v4433_v46 }
 0x3ac   :  { %3945 = vmatmul.mubr.msk.f32.vlgmr.msra.gmra.mrb[6].mxu1 %vm70_vm0, %v4431_v45 }
 0x3ad   :  { %v4435_v48 = vpop.eup %4434 }
 0x3ae   :  { %v4437_v49 = vpop.eup %4436 }
 0x3af   :  { %3947 = vmatprep.mubr.msk.f32.mxu1 %vm70_vm0, %v4437_v49  ;;  %v4261_v50 = vpack.c.bf16 %v4435_v48, %v4437_v49  ;;  %v4884_v49 = vpop.permute.xlu1 %992 }
 0x3b0   :  { %3948 = vmatmul.mubr.msk.f32.gmra.mrb[8].mxu1 %vm70_vm0, %v4435_v48 }
 0x3b1   :  { %3958 = vmatprep.mubr.msk.f32.mxu1 %vm483_vm2, %v4847_v51 }
 0x473   :  { %v3989_v52 = vpop.f32.mrb[10].mxu0 }
 0x474   :  { %v1259_v53 = vadd.f32 %v3989_v52, %v4729_v26  ;;  %v1239_v55 = vpop.f32.mrb[11].mxu0  ;;  %v4886_v52 = vpop.permute.xlu0 %987 }
 0x475   :  { %v1258_v56 = vadd.f32 %v1239_v55, %v4725_v24 }
 0x476   :  { %v3568_v57 = vmul.f32 -1.442695, %v1259_v53 }
 0x477   :  { %v3567_v58 = vmul.f32 -1.442695, %v1258_v56  ;;  %v3992_v59 = vpop.f32.mrb[12].mxu0 }
 0x478   :  { %4438 = vpow2.f32 %v3568_v57  ;;  %v1261_v60 = vadd.f32 %v3992_v59, %v4733_v32  ;;  %v1249_v7 = vpop.f32.mrb[13].mxu0 }
 0x479   :  { %4440 = vpow2.f32 %v3567_v58  ;;  %v1260_v10 = vadd.f32 %v1249_v7, %v4727_v25 }
 0x47a   :  { %v3570_v11 = vmul.f32 -1.442695, %v1261_v60 }
 0x47b   :  { %v3569_v12 = vmul.f32 -1.442695, %v1260_v10 }
 0x47c   :  { %4442 = vpow2.f32 %v3570_v11 }
 0x47d   :  { %4444 = vpow2.f32 %v3569_v12 }
 0x47f   :  { %v3946_v13 = vpop.f32.mrb[6].mxu1 }
 0x480   :  { %v804_v14 = vpop.f32.mrb[7].mxu1 }
 0x481   :  { %v4249_v17 = vpack.c.bf16 %v3946_v13, %v804_v14 }
 0x482   :  { %v4439_v27 = vpop.eup %4438 }
 0x483   :  { %v4441_v29 = vpop.eup %4440  ;;  %v1275_v30 = vadd.f32 1.0, %v4439_v27  ;;  %v3949_v31 = vpop.f32.mrb[8].mxu1  ;;  %4250 = vmatprep.subr.bf16.mxu1 %v4249_v17  ;;  %v4902_v27 = vld [vmem:[%s5104_s0 + $0x10] sm:$0xff] }
 0x484   :  { %v1274_v33 = vadd.f32 1.0, %v4441_v29  ;;  %v814_v34 = vpop.f32.mrb[9].mxu1  ;;  %4252 = vmatpush3.bf16.msra.mxu1 %v4249_v17 }
 0x485   :  { %4446 = vrcp.f32 %v1275_v30  ;;  %v4253_v35 = vpack.c.bf16 %v3949_v31, %v814_v34  ;;  %v3600_v31 = vld [vmem:[%s5105_s1 + $0x10] sm:$0xff] }
 0x486   :  { %v4443_v36 = vpop.eup %4442  ;;  %4448 = vrcp.f32 %v1274_v33 }
 0x487   :  { %v4445_v37 = vpop.eup %4444  ;;  %v1277_v38 = vadd.f32 1.0, %v4443_v36  ;;  %4254 = vmatprep.subr.bf16.mxu1 %v4253_v35 }
 0x488   :  { %v1276_v39 = vadd.f32 1.0, %v4445_v37  ;;  %4256 = vmatpush3.bf16.msra.mxu1 %v4253_v35 }
 0x489   :  { %4450 = vrcp.f32 %v1277_v38  ;;  %4258 = vmatprep.subr.bf16.mxu1 %v4257_v47 }
 0x48a   :  { %4452 = vrcp.f32 %v1276_v39 }
 0x48b   :  { %3959 = vmatmul.mubr.msk.f32.vlgmr.msra.gmra.mrb[10].mxu1 %vm483_vm2, %v4858_v40 }
 0x48c   :  { %4260 = vmatpush3.bf16.msra.mxu1 %v4257_v47  ;;  %3969 = vmatprep.mubr.msk.f32.mxu1 %vm483_vm2, %v4863_v41 }
 0x48d   :  { %4262 = vmatprep.subr.bf16.mxu1 %v4261_v50 }
 0x48f   :  { %v4447_v42 = vpop.eup %4446 }
 0x490   :  { %v4449_v43 = vpop.eup %4448  ;;  %4264 = vmatpush3.bf16.msra.mxu1 %v4261_v50 }
 0x491   :  { %3993 = vmatprep.subr.mxu1 %v4790_v5  ;;  %v4273_v45 = vpack.c.bf16 %v4447_v42, %v4449_v43 }
 0x493   :  { %v4451_v46 = vpop.eup %4450  ;;  %3970 = vmatmul.mubr.msk.f32.vlgmr.msra.gmra.mrb[10].mxu1 %vm483_vm2, %v4872_v44 }
 0x494   :  { %v4453_v47 = vpop.eup %4452  ;;  %3995 = vmatprep.mubr.msk.f32.mxu1 %vm70_vm0, %v4449_v43  ;;  %3994 = vmatpush3.msra.mxu1 %v4790_v5 }
 0x495   :  { %v4277_v48 = vpack.c.bf16 %v4451_v46, %v4453_v47 }
 0x497   :  { %3996 = vmatmul.mubr.msk.f32.vlgmr.msra.gmra.mrb[12].mxu1 %vm70_vm0, %v4447_v42 }
 0x498   :  { %3998 = vmatprep.mubr.msk.f32.mxu1 %vm70_vm0, %v4453_v47 }
 0x49b   :  { %3999 = vmatmul.mubr.msk.f32.gmra.mrb[14].mxu1 %vm70_vm0, %v4451_v46 }
 0x49c   :  { %4009 = vmatprep.mubr.msk.f32.mxu1 %vm483_vm2, %v4744_v54 }
 0x566   :  { %v3971_v50 = vpop.f32.mrb[10].mxu1 }
 0x567   :  { %v996_v53 = vadd.f32 %v3971_v50, %v4884_v49  ;;  %v976_v55 = vpop.f32.mrb[11].mxu1 }
 0x568   :  { %v995_v5 = vadd.f32 %v4886_v52, %v976_v55 }
 0x569   :  { %v3555_v56 = vmul.f32 -1.442695, %v996_v53 }
 0x56a   :  { %v3554_v57 = vmul.f32 -1.442695, %v995_v5  ;;  %v3997_v58 = vpop.f32.mrb[12].mxu1 }
 0x56b   :  { %4454 = vpow2.f32 %v3555_v56  ;;  %v1364_v59 = vpop.f32.mrb[13].mxu1 }
 0x56c   :  { %4456 = vpow2.f32 %v3554_v57  ;;  %v4265_v60 = vpack.c.bf16 %v3997_v58, %v1364_v59 }
 0x56e   :  { %v4000_v7 = vpop.f32.mrb[14].mxu1  ;;  %4266 = vmatprep.subr.bf16.mxu1 %v4265_v60 }
 0x56f   :  { %v1374_v10 = vpop.f32.mrb[15].mxu1  ;;  %4268 = vmatpush3.bf16.msra.mxu1 %v4265_v60 }
 0x570   :  { %v4269_v11 = vpack.c.bf16 %v4000_v7, %v1374_v10 }
 0x572   :  { %4270 = vmatprep.subr.bf16.mxu1 %v4269_v11 }
 0x573   :  { %4272 = vmatpush3.bf16.msra.mxu1 %v4269_v11 }
 0x574   :  { %4274 = vmatprep.subr.bf16.mxu1 %v4273_v45 }
 0x575   :  { %v4455_v12 = vpop.eup %4454 }
 0x576   :  { %v4457_v13 = vpop.eup %4456  ;;  %v1004_v14 = vadd.f32 1.0, %v4455_v12  ;;  %4010 = vmatmul.mubr.msk.f32.vlgmr.msra.gmra.mrb[16].mxu1 %vm483_vm2, %v4751_v61 }
 0x577   :  { %v1003_v17 = vadd.f32 1.0, %v4457_v13  ;;  %4276 = vmatpush3.bf16.msra.mxu1 %v4273_v45  ;;  %4012 = vmatprep.mubr.msk.f32.mxu1 %vm483_vm2, %v4756_v62 }
 0x578   :  { %4458 = vrcp.f32 %v1004_v14  ;;  %4278 = vmatprep.subr.bf16.mxu1 %v4277_v48 }
 0x579   :  { %4460 = vrcp.f32 %v1003_v17 }
 0x57a   :  { %4013 = vmatmul.mubr.msk.f32.gmra.mrb[18].mxu1 %vm483_vm2, %v4765_v63 }
 0x57b   :  { %4280 = vmatpush3.bf16.msra.mxu1 %v4277_v48  ;;  %4023 = vmatprep.mubr.msk.f32.mxu1 %vm483_vm2, %v4770_v1 }
 0x57c   :  { %4059 = vmatprep.subr.mxu1 %v4566_v0 }
 0x57e   :  { %4024 = vmatmul.mubr.msk.f32.vlgmr.msra.gmra.mrb[16].mxu1 %vm483_vm2, %v4779_v2 }
 0x57f   :  { %4026 = vmatprep.mubr.msk.f32.mxu1 %vm483_vm2, %v4784_v4  ;;  %4060 = vmatpush3.msra.mxu1 %v4902_v27 }
 0x582   :  { %v4459_v29 = vpop.eup %4458  ;;  %4027 = vmatmul.mubr.msk.f32.gmra.mrb[18].mxu1 %vm483_vm2, %v4799_v6 }
 0x583   :  { %v4461_v30 = vpop.eup %4460  ;;  %1010 = vst.msk [vmem:[%s5115_s11 + $0x8] sm:$0xff] %vm70_vm0, %v4459_v29  ;;  %4061 = vmatprep.mubr.msk.f32.mxu1 %vm4567_vm1, %v4566_v0 }
 0x584   :  { %1009 = vst.msk [vmem:[%s5115_s11] sm:$0xff] %vm70_vm0, %v4461_v30 }
 0x586   :  { %4062 = vmatmul.mubr.msk.f32.vlgmr.msra.gmra.mrb[20].mxu1 %vm70_vm0, %v3600_v31 }
 0x587   :  { %4066 = vmatprep.mubr.msk.f32.mxu1 %vm70_vm0, %v4642_v3 }
 0x651   :  { %v4025_v33 = vpop.f32.mrb[16].mxu1 }
 0x652   :  { %v1554_v34 = vadd.f32 %v4025_v33, %v4812_v8  ;;  %v1534_v35 = vpop.f32.mrb[17].mxu1 }
 0x653   :  { %v1553_v36 = vadd.f32 %v1534_v35, %v4814_v9 }
 0x654   :  { %v3584_v37 = vmul.f32 -1.442695, %v1554_v34 }
 0x655   :  { %v3583_v38 = vmul.f32 -1.442695, %v1553_v36  ;;  %v4028_v39 = vpop.f32.mrb[18].mxu1 }
 0x656   :  { %4462 = vpow2.f32 %v3584_v37  ;;  %v1556_v42 = vadd.f32 %v4028_v39, %v4818_v15  ;;  %v1544_v43 = vpop.f32.mrb[19].mxu1 }
 0x657   :  { %4464 = vpow2.f32 %v3583_v38  ;;  %v1555_v45 = vadd.f32 %v1544_v43, %v4820_v28 }
 0x658   :  { %v3586_v46 = vmul.f32 -1.442695, %v1556_v42 }
 0x659   :  { %v3585_v47 = vmul.f32 -1.442695, %v1555_v45  ;;  %v1918_v48 = vpop.f32.mrb[20].mxu1 }
 0x65a   :  { %4466 = vpow2.f32 %v3586_v46  ;;  %4064 = vmatprep.subr.mxu1 %v1918_v48  ;;  %v4063_v50 = vpop.f32.mrb[21].mxu1 }
 0x65b   :  { %4468 = vpow2.f32 %v3585_v47  ;;  %4065 = vmatpush3.msra.mxu1 %v1918_v48 }
 0x65c   :  { %4067 = vmatmul.mubr.msk.f32.vlgmr.msra.gmra.mrb[22].mxu1 %vm70_vm0, %v4679_v16  ;;  %4072 = vmatprep.subr.mxu1 %v3600_v31 }
 0x65d   :  { %4069 = vmatprep.mubr.msk.f32.mxu1 %vm70_vm0, %v4684_v18  ;;  %4073 = vmatpush3.msra.mxu1 %v3600_v31 }
 0x65e   :  { %4116 = vmatprep.subr.mxu1 %v4902_v27 }
 0x660   :  { %v4463_v53 = vpop.eup %4462  ;;  %4070 = vmatmul.mubr.msk.f32.gmra.mrb[24].mxu1 %vm70_vm0, %v4693_v19 }
 0x661   :  { %v4465_v55 = vpop.eup %4464  ;;  %v1570_v5 = vadd.f32 1.0, %v4463_v53  ;;  %4074 = vmatprep.mubr.msk.f32.mxu1 %vm70_vm0, %v4698_v20 }
 0x662   :  { %v1569_v56 = vadd.f32 1.0, %v4465_v55 }
 0x663   :  { %4470 = vrcp.f32 %v1570_v5 }
 0x664   :  { %v4467_v57 = vpop.eup %4466  ;;  %4472 = vrcp.f32 %v1569_v56  ;;  %4075 = vmatmul.mubr.msk.f32.vlgmr.msra.gmra.mrb[22].mxu1 %vm70_vm0, %v4707_v21 }
 0x665   :  { %v4469_v58 = vpop.eup %4468  ;;  %v1572_v59 = vadd.f32 1.0, %v4467_v57  ;;  %4077 = vmatprep.mubr.msk.f32.mxu1 %vm70_vm0, %v4712_v22  ;;  %4117 = vmatpush3.msra.mxu1 %v4902_v27 }
 0x666   :  { %v1571_v60 = vadd.f32 1.0, %v4469_v58 }
 0x667   :  { %4474 = vrcp.f32 %v1572_v59 }
 0x668   :  { %4476 = vrcp.f32 %v1571_v60  ;;  %4078 = vmatmul.mubr.msk.f32.gmra.mrb[24].mxu1 %vm70_vm0, %v4721_v23 }
 0x66d   :  { %v4471_v7 = vpop.eup %4470 }
 0x66e   :  { %v4473_v10 = vpop.eup %4472 }
 0x66f   :  { %4031 = vmatprep.mubr.msk.f32.mxu0 %vm70_vm0, %v4473_v10  ;;  %v4289_v11 = vpack.c.bf16 %v4471_v7, %v4473_v10 }
 0x670   :  { %4032 = vmatmul.mubr.msk.f32.vlgmr.msra.gmra.mrb[14].mxu0 %vm70_vm0, %v4471_v7 }
 0x671   :  { %v4475_v12 = vpop.eup %4474 }
 0x672   :  { %v4477_v13 = vpop.eup %4476 }
 0x673   :  { %4034 = vmatprep.mubr.msk.f32.mxu0 %vm70_vm0, %v4477_v13  ;;  %v4293_v14 = vpack.c.bf16 %v4475_v12, %v4477_v13 }
 0x674   :  { %4035 = vmatmul.mubr.msk.f32.gmra.mrb[16].mxu0 %vm70_vm0, %v4475_v12 }
 0x675   :  { %4045 = vmatprep.mubr.msk.f32.mxu0 %vm483_vm2, %v4847_v51 }
 0x737   :  { %v4076_v17 = vpop.f32.mrb[22].mxu1 }
 0x738   :  { %v2093_v29 = vadd.f32 %v4076_v17, %v4729_v26  ;;  %v2073_v30 = vpop.f32.mrb[23].mxu1 }
 0x739   :  { %v2092_v31 = vadd.f32 %v2073_v30, %v4725_v24 }
 0x73a   :  { %v3611_v33 = vmul.f32 -1.442695, %v2093_v29 }
 0x73b   :  { %v3610_v34 = vmul.f32 -1.442695, %v2092_v31  ;;  %v4079_v35 = vpop.f32.mrb[24].mxu1 }
 0x73c   :  { %4478 = vpow2.f32 %v3611_v33  ;;  %v2095_v36 = vadd.f32 %v4079_v35, %v4733_v32  ;;  %v2083_v37 = vpop.f32.mrb[25].mxu1 }
 0x73d   :  { %4480 = vpow2.f32 %v3610_v34  ;;  %v2094_v38 = vadd.f32 %v2083_v37, %v4727_v25 }
 0x73e   :  { %v3613_v39 = vmul.f32 -1.442695, %v2095_v36 }
 0x73f   :  { %v3612_v42 = vmul.f32 -1.442695, %v2094_v38 }
 0x740   :  { %4482 = vpow2.f32 %v3613_v39 }
 0x741   :  { %4484 = vpow2.f32 %v3612_v42 }
 0x743   :  { %v4033_v43 = vpop.f32.mrb[14].mxu0 }
 0x744   :  { %v1659_v45 = vpop.f32.mrb[15].mxu0 }
 0x745   :  { %v4281_v46 = vpack.c.bf16 %v4033_v43, %v1659_v45 }
 0x746   :  { %v4479_v47 = vpop.eup %4478 }
 0x747   :  { %v4481_v48 = vpop.eup %4480  ;;  %v2109_v50 = vadd.f32 1.0, %v4479_v47  ;;  %v4036_v53 = vpop.f32.mrb[16].mxu0  ;;  %4282 = vmatprep.subr.bf16.mxu0 %v4281_v46  ;;  %v4985_v47 = vld [vmem:[%s5104_s0 + $0x18] sm:$0xff] }
 0x748   :  { %v2108_v55 = vadd.f32 1.0, %v4481_v48  ;;  %v1669_v5 = vpop.f32.mrb[17].mxu0  ;;  %4284 = vmatpush3.bf16.msra.mxu0 %v4281_v46 }
 0x749   :  { %4486 = vrcp.f32 %v2109_v50  ;;  %v4285_v56 = vpack.c.bf16 %v4036_v53, %v1669_v5  ;;  %v3643_v53 = vld [vmem:[%s5105_s1 + $0x18] sm:$0xff] }
 0x74a   :  { %v4483_v57 = vpop.eup %4482  ;;  %4488 = vrcp.f32 %v2108_v55 }
 0x74b   :  { %v4485_v58 = vpop.eup %4484  ;;  %v2111_v59 = vadd.f32 1.0, %v4483_v57  ;;  %4286 = vmatprep.subr.bf16.mxu0 %v4285_v56 }
 0x74c   :  { %v2110_v60 = vadd.f32 1.0, %v4485_v58  ;;  %4288 = vmatpush3.bf16.msra.mxu0 %v4285_v56 }
 0x74d   :  { %4490 = vrcp.f32 %v2111_v59  ;;  %4290 = vmatprep.subr.bf16.mxu0 %v4289_v11 }
 0x74e   :  { %4492 = vrcp.f32 %v2110_v60 }
 0x74f   :  { %4046 = vmatmul.mubr.msk.f32.vlgmr.msra.gmra.mrb[18].mxu0 %vm483_vm2, %v4858_v40 }
 0x750   :  { %4292 = vmatpush3.bf16.msra.mxu0 %v4289_v11  ;;  %4056 = vmatprep.mubr.msk.f32.mxu0 %vm483_vm2, %v4863_v41 }
 0x751   :  { %4294 = vmatprep.subr.bf16.mxu0 %v4293_v14 }
 0x753   :  { %v4487_v7 = vpop.eup %4486 }
 0x754   :  { %v4489_v10 = vpop.eup %4488  ;;  %4296 = vmatpush3.bf16.msra.mxu0 %v4293_v14 }
 0x755   :  { %4080 = vmatprep.subr.mxu0 %v4902_v27  ;;  %v4305_v12 = vpack.c.bf16 %v4487_v7, %v4489_v10 }
 0x757   :  { %v4491_v13 = vpop.eup %4490  ;;  %4057 = vmatmul.mubr.msk.f32.vlgmr.msra.gmra.mrb[18].mxu0 %vm483_vm2, %v4872_v44 }
 0x758   :  { %v4493_v17 = vpop.eup %4492  ;;  %4082 = vmatprep.mubr.msk.f32.mxu0 %vm70_vm0, %v4489_v10  ;;  %4081 = vmatpush3.msra.mxu0 %v4902_v27 }
 0x759   :  { %v4309_v11 = vpack.c.bf16 %v4491_v13, %v4493_v17 }
 0x75b   :  { %4083 = vmatmul.mubr.msk.f32.vlgmr.msra.gmra.mrb[20].mxu0 %vm70_vm0, %v4487_v7 }
 0x75c   :  { %4085 = vmatprep.mubr.msk.f32.mxu0 %vm70_vm0, %v4493_v17 }
 0x75f   :  { %4086 = vmatmul.mubr.msk.f32.gmra.mrb[22].mxu0 %vm70_vm0, %v4491_v13 }
 0x760   :  { %4096 = vmatprep.mubr.msk.f32.mxu0 %vm483_vm2, %v4744_v54 }
 0x82a   :  { %v4058_v14 = vpop.f32.mrb[18].mxu0 }
 0x82b   :  { %v1829_v29 = vadd.f32 %v4058_v14, %v4884_v49  ;;  %v1819_v30 = vpop.f32.mrb[19].mxu0 }
 0x82c   :  { %v1828_v31 = vadd.f32 %v1819_v30, %v4886_v52 }
 0x82d   :  { %v3596_v33 = vmul.f32 -1.442695, %v1829_v29 }
 0x82e   :  { %v3595_v34 = vmul.f32 -1.442695, %v1828_v31  ;;  %v4084_v35 = vpop.f32.mrb[20].mxu0 }
 0x82f   :  { %4494 = vpow2.f32 %v3596_v33  ;;  %v2198_v27 = vpop.f32.mrb[21].mxu0 }
 0x830   :  { %4496 = vpow2.f32 %v3595_v34  ;;  %v4297_v36 = vpack.c.bf16 %v4084_v35, %v2198_v27 }
 0x832   :  { %v4087_v37 = vpop.f32.mrb[22].mxu0  ;;  %4298 = vmatprep.subr.bf16.mxu0 %v4297_v36 }
 0x833   :  { %v2208_v38 = vpop.f32.mrb[23].mxu0  ;;  %4300 = vmatpush3.bf16.msra.mxu0 %v4297_v36 }
 0x834   :  { %v4301_v39 = vpack.c.bf16 %v4087_v37, %v2208_v38 }
 0x836   :  { %4302 = vmatprep.subr.bf16.mxu0 %v4301_v39 }
 0x837   :  { %4304 = vmatpush3.bf16.msra.mxu0 %v4301_v39 }
 0x838   :  { %4306 = vmatprep.subr.bf16.mxu0 %v4305_v12 }
 0x839   :  { %v4495_v42 = vpop.eup %4494 }
 0x83a   :  { %v4497_v43 = vpop.eup %4496  ;;  %v1837_v45 = vadd.f32 1.0, %v4495_v42  ;;  %4097 = vmatmul.mubr.msk.f32.vlgmr.msra.gmra.mrb[24].mxu0 %vm483_vm2, %v4751_v61 }
 0x83b   :  { %v1836_v46 = vadd.f32 1.0, %v4497_v43  ;;  %4308 = vmatpush3.bf16.msra.mxu0 %v4305_v12  ;;  %4099 = vmatprep.mubr.msk.f32.mxu0 %vm483_vm2, %v4756_v62 }
 0x83c   :  { %4498 = vrcp.f32 %v1837_v45  ;;  %4310 = vmatprep.subr.bf16.mxu0 %v4309_v11 }
 0x83d   :  { %4500 = vrcp.f32 %v1836_v46 }
 0x83e   :  { %4100 = vmatmul.mubr.msk.f32.gmra.mrb[26].mxu0 %vm483_vm2, %v4765_v63 }
 0x83f   :  { %4312 = vmatpush3.bf16.msra.mxu0 %v4309_v11  ;;  %4110 = vmatprep.mubr.msk.f32.mxu0 %vm483_vm2, %v4770_v1 }
 0x840   :  { %4146 = vmatprep.subr.mxu0 %v4566_v0 }
 0x842   :  { %4111 = vmatmul.mubr.msk.f32.vlgmr.msra.gmra.mrb[24].mxu0 %vm483_vm2, %v4779_v2 }
 0x843   :  { %4113 = vmatprep.mubr.msk.f32.mxu0 %vm483_vm2, %v4784_v4  ;;  %4147 = vmatpush3.msra.mxu0 %v4985_v47 }
 0x846   :  { %v4499_v48 = vpop.eup %4498  ;;  %4114 = vmatmul.mubr.msk.f32.gmra.mrb[26].mxu0 %vm483_vm2, %v4799_v6 }
 0x847   :  { %v4501_v50 = vpop.eup %4500  ;;  %3598 = vst.msk [vmem:[%s5115_s11 + $0x18] sm:$0xff] %vm70_vm0, %v4499_v48  ;;  %4148 = vmatprep.mubr.msk.f32.mxu0 %vm4567_vm1, %v4566_v0 }
 0x848   :  { %3597 = vst.msk [vmem:[%s5115_s11 + $0x10] sm:$0xff] %vm70_vm0, %v4501_v50 }
 0x84a   :  { %4149 = vmatmul.mubr.msk.f32.vlgmr.msra.gmra.mrb[28].mxu0 %vm70_vm0, %v3643_v53 }
 0x84b   :  { %4153 = vmatprep.mubr.msk.f32.mxu0 %vm70_vm0, %v4642_v3 }
 0x915   :  { %v4112_v55 = vpop.f32.mrb[24].mxu0 }
 0x916   :  { %v2388_v5 = vadd.f32 %v4112_v55, %v4812_v8  ;;  %v2368_v56 = vpop.f32.mrb[25].mxu0 }
 0x917   :  { %v2387_v0 = vadd.f32 %v2368_v56, %v4814_v9 }
 0x918   :  { %v3627_v57 = vmul.f32 -1.442695, %v2388_v5 }
 0x919   :  { %v3626_v58 = vmul.f32 -1.442695, %v2387_v0  ;;  %v4115_v59 = vpop.f32.mrb[26].mxu0 }
 0x91a   :  { %4502 = vpow2.f32 %v3627_v57  ;;  %v2390_v60 = vadd.f32 %v4115_v59, %v4818_v15  ;;  %v2378_v7 = vpop.f32.mrb[27].mxu0 }
 0x91b   :  { %4504 = vpow2.f32 %v3626_v58  ;;  %v2389_v10 = vadd.f32 %v2378_v7, %v4820_v28 }
 0x91c   :  { %v3629_v12 = vmul.f32 -1.442695, %v2390_v60 }
 0x91d   :  { %v3628_v13 = vmul.f32 -1.442695, %v2389_v10  ;;  %v2752_v17 = vpop.f32.mrb[28].mxu0 }
 0x91e   :  { %4506 = vpow2.f32 %v3629_v12  ;;  %4151 = vmatprep.subr.mxu0 %v2752_v17  ;;  %v4150_v3 = vpop.f32.mrb[29].mxu0 }
 0x91f   :  { %4508 = vpow2.f32 %v3628_v13  ;;  %4152 = vmatpush3.msra.mxu0 %v2752_v17 }
 0x920   :  { %4154 = vmatmul.mubr.msk.f32.vlgmr.msra.gmra.mrb[30].mxu0 %vm70_vm0, %v4679_v16  ;;  %4159 = vmatprep.subr.mxu0 %v3643_v53 }
 0x921   :  { %4156 = vmatprep.mubr.msk.f32.mxu0 %vm70_vm0, %v4684_v18  ;;  %4160 = vmatpush3.msra.mxu0 %v3643_v53 }
 0x922   :  { %4203 = vmatprep.subr.mxu0 %v4985_v47 }
 0x924   :  { %v4503_v11 = vpop.eup %4502  ;;  %4157 = vmatmul.mubr.msk.f32.gmra.mrb[32].mxu0 %vm70_vm0, %v4693_v19 }
 0x925   :  { %v4505_v14 = vpop.eup %4504  ;;  %v2404_v29 = vadd.f32 1.0, %v4503_v11  ;;  %4161 = vmatprep.mubr.msk.f32.mxu0 %vm70_vm0, %v4698_v20 }
 0x926   :  { %v2403_v30 = vadd.f32 1.0, %v4505_v14 }
 0x927   :  { %4510 = vrcp.f32 %v2404_v29 }
 0x928   :  { %v4507_v31 = vpop.eup %4506  ;;  %4512 = vrcp.f32 %v2403_v30  ;;  %4162 = vmatmul.mubr.msk.f32.vlgmr.msra.gmra.mrb[30].mxu0 %vm70_vm0, %v4707_v21 }
 0x929   :  { %v4509_v16 = vpop.eup %4508  ;;  %v2406_v18 = vadd.f32 1.0, %v4507_v31  ;;  %4164 = vmatprep.mubr.msk.f32.mxu0 %vm70_vm0, %v4712_v22  ;;  %4204 = vmatpush3.msra.mxu0 %v4985_v47 }
 0x92a   :  { %v2405_v19 = vadd.f32 1.0, %v4509_v16 }
 0x92b   :  { %4514 = vrcp.f32 %v2406_v18 }
 0x92c   :  { %4516 = vrcp.f32 %v2405_v19  ;;  %4165 = vmatmul.mubr.msk.f32.gmra.mrb[32].mxu0 %vm70_vm0, %v4721_v23 }
 0x931   :  { %v4511_v20 = vpop.eup %4510 }
 0x932   :  { %v4513_v33 = vpop.eup %4512 }
 0x933   :  { %4118 = vmatprep.mubr.msk.f32.mxu1 %vm70_vm0, %v4513_v33  ;;  %v4321_v34 = vpack.c.bf16 %v4511_v20, %v4513_v33 }
 0x934   :  { %4119 = vmatmul.mubr.msk.f32.vlgmr.msra.gmra.mrb[26].mxu1 %vm70_vm0, %v4511_v20 }
 0x935   :  { %v4515_v21 = vpop.eup %4514 }
 0x936   :  { %v4517_v35 = vpop.eup %4516 }
 0x937   :  { %4121 = vmatprep.mubr.msk.f32.mxu1 %vm70_vm0, %v4517_v35  ;;  %v4325_v22 = vpack.c.bf16 %v4515_v21, %v4517_v35 }
 0x938   :  { %4122 = vmatmul.mubr.msk.f32.gmra.mrb[28].mxu1 %vm70_vm0, %v4515_v21 }
 0x939   :  { %4132 = vmatprep.mubr.msk.f32.mxu1 %vm483_vm2, %v4847_v51 }
 0x9fb   :  { %v4163_v27 = vpop.f32.mrb[30].mxu0 }
 0x9fc   :  { %v2927_v23 = vadd.f32 %v4163_v27, %v4729_v26  ;;  %v2907_v36 = vpop.f32.mrb[31].mxu0 }
 0x9fd   :  { %v2926_v37 = vadd.f32 %v2907_v36, %v4725_v24 }
 0x9fe   :  { %v3654_v38 = vmul.f32 -1.442695, %v2927_v23 }
 0x9ff   :  { %v3653_v39 = vmul.f32 -1.442695, %v2926_v37  ;;  %v4166_v42 = vpop.f32.mrb[32].mxu0 }
 0xa00   :  { %4518 = vpow2.f32 %v3654_v38  ;;  %v2929_v43 = vadd.f32 %v4166_v42, %v4733_v32  ;;  %v2917_v45 = vpop.f32.mrb[33].mxu0 }
 0xa01   :  { %4520 = vpow2.f32 %v3653_v39  ;;  %v2928_v46 = vadd.f32 %v2917_v45, %v4727_v25 }
 0xa02   :  { %v3656_v48 = vmul.f32 -1.442695, %v2929_v43 }
 0xa03   :  { %v3655_v50 = vmul.f32 -1.442695, %v2928_v46 }
 0xa04   :  { %4522 = vpow2.f32 %v3656_v48 }
 0xa05   :  { %4524 = vpow2.f32 %v3655_v50 }
 0xa07   :  { %v4120_v53 = vpop.f32.mrb[26].mxu1 }
 0xa08   :  { %v2493_v55 = vpop.f32.mrb[27].mxu1 }
 0xa09   :  { %v4313_v26 = vpack.c.bf16 %v4120_v53, %v2493_v55 }
 0xa0a   :  { %v4519_v5 = vpop.eup %4518 }
 0xa0b   :  { %v4521_v56 = vpop.eup %4520  ;;  %v2943_v24 = vadd.f32 1.0, %v4519_v5  ;;  %v4123_v0 = vpop.f32.mrb[28].mxu1  ;;  %4314 = vmatprep.subr.bf16.mxu1 %v4313_v26 }
 0xa0c   :  { %v2942_v57 = vadd.f32 1.0, %v4521_v56  ;;  %v2503_v58 = vpop.f32.mrb[29].mxu1  ;;  %4316 = vmatpush3.bf16.msra.mxu1 %v4313_v26 }
 0xa0d   :  { %4526 = vrcp.f32 %v2943_v24  ;;  %v4317_v32 = vpack.c.bf16 %v4123_v0, %v2503_v58 }
 0xa0e   :  { %v4523_v59 = vpop.eup %4522  ;;  %4528 = vrcp.f32 %v2942_v57 }
 0xa0f   :  { %v4525_v25 = vpop.eup %4524  ;;  %v2945_v60 = vadd.f32 1.0, %v4523_v59  ;;  %4318 = vmatprep.subr.bf16.mxu1 %v4317_v32 }
 0xa10   :  { %v2944_v7 = vadd.f32 1.0, %v4525_v25  ;;  %4320 = vmatpush3.bf16.msra.mxu1 %v4317_v32 }
 0xa11   :  { %4530 = vrcp.f32 %v2945_v60  ;;  %4322 = vmatprep.subr.bf16.mxu1 %v4321_v34 }
 0xa12   :  { %4532 = vrcp.f32 %v2944_v7 }
 0xa13   :  { %4133 = vmatmul.mubr.msk.f32.vlgmr.msra.gmra.mrb[30].mxu1 %vm483_vm2, %v4858_v40 }
 0xa14   :  { %4324 = vmatpush3.bf16.msra.mxu1 %v4321_v34  ;;  %4143 = vmatprep.mubr.msk.f32.mxu1 %vm483_vm2, %v4863_v41 }
 0xa15   :  { %4326 = vmatprep.subr.bf16.mxu1 %v4325_v22 }
 0xa17   :  { %v4527_v10 = vpop.eup %4526 }
 0xa18   :  { %v4529_v12 = vpop.eup %4528  ;;  %4328 = vmatpush3.bf16.msra.mxu1 %v4325_v22 }
 0xa19   :  { %4167 = vmatprep.subr.mxu1 %v4985_v47  ;;  %v4337_v13 = vpack.c.bf16 %v4527_v10, %v4529_v12 }
 0xa1b   :  { %v4531_v17 = vpop.eup %4530  ;;  %4144 = vmatmul.mubr.msk.f32.vlgmr.msra.gmra.mrb[30].mxu1 %vm483_vm2, %v4872_v44 }
 0xa1c   :  { %v4533_v3 = vpop.eup %4532  ;;  %4169 = vmatprep.mubr.msk.f32.mxu1 %vm70_vm0, %v4529_v12  ;;  %4168 = vmatpush3.msra.mxu1 %v4985_v47 }
 0xa1d   :  { %v4341_v11 = vpack.c.bf16 %v4531_v17, %v4533_v3 }
 0xa1f   :  { %4170 = vmatmul.mubr.msk.f32.vlgmr.msra.gmra.mrb[32].mxu1 %vm70_vm0, %v4527_v10 }
 0xa20   :  { %4172 = vmatprep.mubr.msk.f32.mxu1 %vm70_vm0, %v4533_v3 }
 0xa23   :  { %4173 = vmatmul.mubr.msk.f32.gmra.mrb[34].mxu1 %vm70_vm0, %v4531_v17 }
 0xa24   :  { %4183 = vmatprep.mubr.msk.f32.mxu1 %vm483_vm2, %v4744_v54 }
 0xaee   :  { %v4145_v14 = vpop.f32.mrb[30].mxu1 }
 0xaef   :  { %v2663_v29 = vadd.f32 %v4145_v14, %v4884_v49  ;;  %v2653_v30 = vpop.f32.mrb[31].mxu1 }
 0xaf0   :  { %v2662_v31 = vadd.f32 %v2653_v30, %v4886_v52 }
 0xaf1   :  { %v3639_v16 = vmul.f32 -1.442695, %v2663_v29 }
 0xaf2   :  { %v3638_v18 = vmul.f32 -1.442695, %v2662_v31  ;;  %v4171_v19 = vpop.f32.mrb[32].mxu1 }
 0xaf3   :  { %4534 = vpow2.f32 %v3639_v16  ;;  %v3032_v47 = vpop.f32.mrb[33].mxu1 }
 0xaf4   :  { %4536 = vpow2.f32 %v3638_v18  ;;  %v4329_v20 = vpack.c.bf16 %v4171_v19, %v3032_v47 }
 0xaf6   :  { %v4174_v33 = vpop.f32.mrb[34].mxu1  ;;  %4330 = vmatprep.subr.bf16.mxu1 %v4329_v20 }
 0xaf7   :  { %v3042_v34 = vpop.f32.mrb[35].mxu1  ;;  %4332 = vmatpush3.bf16.msra.mxu1 %v4329_v20 }
 0xaf8   :  { %v4333_v21 = vpack.c.bf16 %v4174_v33, %v3042_v34 }
 0xafa   :  { %4334 = vmatprep.subr.bf16.mxu1 %v4333_v21 }
 0xafb   :  { %4336 = vmatpush3.bf16.msra.mxu1 %v4333_v21 }
 0xafc   :  { %4338 = vmatprep.subr.bf16.mxu1 %v4337_v13 }
 0xafd   :  { %v4535_v54 = vpop.eup %4534 }
 0xafe   :  { %v4537_v35 = vpop.eup %4536  ;;  %v2671_v22 = vadd.f32 1.0, %v4535_v54  ;;  %4184 = vmatmul.mubr.msk.f32.vlgmr.msra.gmra.mrb[36].mxu1 %vm483_vm2, %v4751_v61 }
 0xaff   :  { %v2670_v27 = vadd.f32 1.0, %v4537_v35  ;;  %4340 = vmatpush3.bf16.msra.mxu1 %v4337_v13  ;;  %4186 = vmatprep.mubr.msk.f32.mxu1 %vm483_vm2, %v4756_v62 }
 0xb00   :  { %4538 = vrcp.f32 %v2671_v22  ;;  %4342 = vmatprep.subr.bf16.mxu1 %v4341_v11 }
 0xb01   :  { %4540 = vrcp.f32 %v2670_v27 }
 0xb02   :  { %4187 = vmatmul.mubr.msk.f32.gmra.mrb[38].mxu1 %vm483_vm2, %v4765_v63 }
 0xb03   :  { %4344 = vmatpush3.bf16.msra.mxu1 %v4341_v11  ;;  %4197 = vmatprep.mubr.msk.f32.mxu1 %vm483_vm2, %v4770_v1 }
 0xb06   :  { %4198 = vmatmul.mubr.msk.f32.vlgmr.msra.gmra.mrb[36].mxu1 %vm483_vm2, %v4779_v2 }
 0xb07   :  { %4200 = vmatprep.mubr.msk.f32.mxu1 %vm483_vm2, %v4784_v4 }
 0xb0a   :  { %v4539_v61 = vpop.eup %4538  ;;  %4201 = vmatmul.mubr.msk.f32.gmra.mrb[38].mxu1 %vm483_vm2, %v4799_v6 }
 0xb0b   :  { %v4541_v62 = vpop.eup %4540  ;;  %3641 = vst.msk [vmem:[%s5115_s11 + $0x28] sm:$0xff] %vm70_vm0, %v4539_v61 }
 0xb0c   :  { %3640 = vst.msk [vmem:[%s5115_s11 + $0x20] sm:$0xff] %vm70_vm0, %v4541_v62 }
 0xbd9   :  { %v4199_v63 = vpop.f32.mrb[36].mxu1 }
 0xbda   :  { %v3222_v1 = vadd.f32 %v4199_v63, %v4812_v8  ;;  %v3202_v2 = vpop.f32.mrb[37].mxu1 }
 0xbdb   :  { %v3221_v4 = vadd.f32 %v3202_v2, %v4814_v9 }
 0xbdc   :  { %v3670_v23 = vmul.f32 -1.442695, %v3222_v1 }
 0xbdd   :  { %v3669_v36 = vmul.f32 -1.442695, %v3221_v4  ;;  %v4202_v6 = vpop.f32.mrb[38].mxu1 }
 0xbde   :  { %4542 = vpow2.f32 %v3670_v23  ;;  %v3224_v37 = vadd.f32 %v4202_v6, %v4818_v15  ;;  %v3212_v38 = vpop.f32.mrb[39].mxu1 }
 0xbdf   :  { %4544 = vpow2.f32 %v3669_v36  ;;  %v3223_v39 = vadd.f32 %v3212_v38, %v4820_v28 }
 0xbe0   :  { %v3672_v42 = vmul.f32 -1.442695, %v3224_v37 }
 0xbe1   :  { %v3671_v43 = vmul.f32 -1.442695, %v3223_v39 }
 0xbe2   :  { %4546 = vpow2.f32 %v3672_v42 }
 0xbe3   :  { %4548 = vpow2.f32 %v3671_v43 }
 0xbe8   :  { %v4543_v45 = vpop.eup %4542 }
 0xbe9   :  { %v4545_v46 = vpop.eup %4544  ;;  %v3238_v8 = vadd.f32 1.0, %v4543_v45 }
 0xbea   :  { %v3237_v48 = vadd.f32 1.0, %v4545_v46 }
 0xbeb   :  { %4550 = vrcp.f32 %v3238_v8 }
 0xbec   :  { %v4547_v9 = vpop.eup %4546  ;;  %4552 = vrcp.f32 %v3237_v48 }
 0xbed   :  { %v4549_v50 = vpop.eup %4548  ;;  %v3240_v53 = vadd.f32 1.0, %v4547_v9 }
 0xbee   :  { %v3239_v55 = vadd.f32 1.0, %v4549_v50 }
 0xbef   :  { %4554 = vrcp.f32 %v3240_v53 }
 0xbf0   :  { %4556 = vrcp.f32 %v3239_v55 }
 0xbf5   :  { %v4551_v15 = vpop.eup %4550 }
 0xbf6   :  { %v4553_v26 = vpop.eup %4552 }
 0xbf7   :  { %4205 = vmatprep.mubr.msk.f32.mxu0 %vm70_vm0, %v4553_v26  ;;  %v4353_v28 = vpack.c.bf16 %v4551_v15, %v4553_v26 }
 0xbf8   :  { %4206 = vmatmul.mubr.msk.f32.vlgmr.msra.gmra.mrb[34].mxu0 %vm70_vm0, %v4551_v15 }
 0xbf9   :  { %v4555_v5 = vpop.eup %4554 }
 0xbfa   :  { %v4557_v56 = vpop.eup %4556 }
 0xbfb   :  { %4208 = vmatprep.mubr.msk.f32.mxu0 %vm70_vm0, %v4557_v56  ;;  %v4357_v24 = vpack.c.bf16 %v4555_v5, %v4557_v56 }
 0xbfc   :  { %4209 = vmatmul.mubr.msk.f32.gmra.mrb[36].mxu0 %vm70_vm0, %v4555_v5 }
 0xbfd   :  { %4219 = vmatprep.mubr.msk.f32.mxu0 %vm483_vm2, %v4847_v51 }
 0xccb   :  { %v4207_v0 = vpop.f32.mrb[34].mxu0 }
 0xccc   :  { %v3327_v57 = vpop.f32.mrb[35].mxu0 }
 0xccd   :  { %v4345_v58 = vpack.c.bf16 %v4207_v0, %v3327_v57 }
 0xccf   :  { %v4210_v32 = vpop.f32.mrb[36].mxu0  ;;  %4346 = vmatprep.subr.bf16.mxu0 %v4345_v58 }
 0xcd0   :  { %v3337_v59 = vpop.f32.mrb[37].mxu0  ;;  %4348 = vmatpush3.bf16.msra.mxu0 %v4345_v58 }
 0xcd1   :  { %v4349_v25 = vpack.c.bf16 %v4210_v32, %v3337_v59 }
 0xcd3   :  { %4350 = vmatprep.subr.bf16.mxu0 %v4349_v25 }
 0xcd4   :  { %4352 = vmatpush3.bf16.msra.mxu0 %v4349_v25 }
 0xcd5   :  { %4354 = vmatprep.subr.bf16.mxu0 %v4353_v28 }
 0xcd7   :  { %4220 = vmatmul.mubr.msk.f32.vlgmr.msra.gmra.mrb[38].mxu0 %vm483_vm2, %v4858_v40 }
 0xcd8   :  { %4356 = vmatpush3.bf16.msra.mxu0 %v4353_v28  ;;  %4230 = vmatprep.mubr.msk.f32.mxu0 %vm483_vm2, %v4863_v41 }
 0xcd9   :  { %4358 = vmatprep.subr.bf16.mxu0 %v4357_v24 }
 0xcdc   :  { %4360 = vmatpush3.bf16.msra.mxu0 %v4357_v24 }
 0xcdf   :  { %4231 = vmatmul.mubr.msk.f32.vlgmr.msra.gmra.mrb[38].mxu0 %vm483_vm2, %v4872_v44 }
 0xdb2   :  { %v4232_v51 = vpop.f32.mrb[38].mxu0 }
 0xdb3   :  { %v3497_v60 = vadd.f32 %v4232_v51, %v4884_v49  ;;  %v3487_v7 = vpop.f32.mrb[39].mxu0 }
 0xdb4   :  { %v3496_v10 = vadd.f32 %v3487_v7, %v4886_v52 }
 0xdb5   :  { %v3682_v12 = vmul.f32 -1.442695, %v3497_v60 }
 0xdb6   :  { %v3681_v13 = vmul.f32 -1.442695, %v3496_v10 }
 0xdb7   :  { %4558 = vpow2.f32 %v3682_v12 }
 0xdb8   :  { %4560 = vpow2.f32 %v3681_v13 }
 0xdc1   :  { %v4559_v40 = vpop.eup %4558 }
 0xdc2   :  { %v4561_v17 = vpop.eup %4560  ;;  %v3505_v3 = vadd.f32 1.0, %v4559_v40 }
 0xdc3   :  { %v3504_v11 = vadd.f32 1.0, %v4561_v17 }
 0xdc4   :  { %4562 = vrcp.f32 %v3505_v3 }
 0xdc5   :  { %4564 = vrcp.f32 %v3504_v11 }
 0xdce   :  { %v4563_v41 = vpop.eup %4562 }
 0xdcf   :  { %v4565_v14 = vpop.eup %4564  ;;  %3684 = vst.msk [vmem:[%s5115_s11 + $0x38] sm:$0xff] %vm70_vm0, %v4563_v41 }
 0xdd0   :  { %3683 = vst.msk [vmem:[%s5115_s11 + $0x30] sm:$0xff] %vm70_vm0, %v4565_v14 }

</bundles_post_ra>
